<compile_context>
chip_gen: v7x
topology: tpu7x:2x2x1
jax: 0.10.0
libtpu: 0.0.40
codegen_flags: <defaults>
</compile_context>

<pallas_src>
import jax
import jax.numpy as jnp
from jax import lax
from jax.experimental import pallas as pl
from jax.experimental.pallas import tpu as pltpu


# ----------------------------------------------------------------------------
# Scalar / buffer glue (runs as tiny plain-JAX ops outside the kernel).
# TODO(synk): the module's in-place state updates (self.ŷ, self.μ, iteration)
# are returned as outputs; the bincount over the persistent label buffer stays
# in plain JAX since it only touches module state, not the batch tensors.
# ----------------------------------------------------------------------------
def compute_tau(num_classes, threshold, warmup, iteration):
    """τ schedule; jnp-traceable so `iteration` can change without recompiles."""
    thr = jnp.asarray(threshold, jnp.float32)
    if warmup <= 0:
        return thr
    t = jnp.asarray(iteration, jnp.float32) / float(warmup)
    lo = -jnp.log(thr)                                    # min = -log(threshold)
    hi = jnp.log(jnp.asarray(float(num_classes), jnp.float32))  # max = log(C)
    ann = lo + (hi - lo) * 0.5 * (1.0 + jnp.cos(t * jnp.pi))
    warm = jnp.exp(-ann)
    return jnp.where(jnp.asarray(iteration) < warmup, warm, thr).astype(jnp.float32)


def compute_beta(y_buf, num_classes):
    # β = bincount(Ŷ, minlength=C+1); β[C] = 1; β = β / (2*max(β) - β)
    beta = jnp.bincount(y_buf, length=num_classes + 1)
    beta = beta.at[num_classes].set(1).astype(jnp.float32)
    return beta / (2.0 * jnp.max(beta) - beta)            # [C+1]; only β[0:C] is gathered


# ----------------------------------------------------------------------------
# Kernel
# ----------------------------------------------------------------------------
def _make_kernel(num_classes, temperature, threshold, approx_reciprocal):
    inv_t = 1.0 / float(temperature)
    thr = float(threshold)
    C = int(num_classes)

    def kernel(tau_ref, lw_ref, ls_ref, beta_ref, loss_ref, mu_ref, yhat_ref):
        tau = tau_ref[0]                                   # runtime scalar from SMEM

        # ---- weak branch: confidence + pseudo label (no full softmax) ------
        lw = lw_ref[...].astype(jnp.float32) * inv_t       # (TB, C) f32
        mw = jnp.max(lw, axis=-1, keepdims=True)           # (TB, 1)
        denom = jnp.sum(jnp.exp(lw - mw), axis=-1, keepdims=True)   # (TB, 1)
        # max softmax prob == exp(0)/denom == 1/denom
        conf = pl.reciprocal(denom, approx=approx_reciprocal)        # (TB, 1)

        col = lax.broadcasted_iota(jnp.int32, lw.shape, 1)  # (TB, C)
        # first index attaining the max (ties broken like torch/jnp argmax)
        yhat = jnp.min(jnp.where(lw >= mw, col, C), axis=-1, keepdims=True)  # (TB,1)
        onehot = (col == yhat)                              # shared by both gathers

        # ---- β[ŷ] gather + flex threshold mask -----------------------------
        beta_y = jnp.sum(jnp.where(onehot, beta_ref[...], 0.0),
                         axis=-1, keepdims=True)            # (TB, 1)
        mask = (conf > tau * beta_y).astype(jnp.float32)    # (TB, 1)

        # ---- strong branch: cross entropy with pseudo label ŷ ---------------
        ls = ls_ref[...].astype(jnp.float32)                # (TB, C)
        ms = jnp.max(ls, axis=-1, keepdims=True)
        lse = ms + jnp.log(jnp.sum(jnp.exp(ls - ms), axis=-1, keepdims=True))
        ls_y = jnp.sum(jnp.where(onehot, ls, 0.0), axis=-1, keepdims=True)
        ce = lse - ls_y                                     # (TB, 1)

        # ---- per-tile partial sums, written to an aligned (1,8,128) block ---
        # (keeps the grid axis embarrassingly parallel -> megacore on v7x)
        loss_ref[...] = jnp.broadcast_to(jnp.sum(ce * mask), loss_ref.shape)
        mu_ref[...] = jnp.broadcast_to(jnp.sum(mask), mu_ref.shape)

        # ---- persistent pseudo-label state: where(conf > threshold, ŷ, -1) --
        yhat_ref[...] = jnp.where(conf > thr, yhat, -1).astype(jnp.int32)

    return kernel


# ----------------------------------------------------------------------------
# Wrapper: VMEM-budgeted tiling + pallas_call
# ----------------------------------------------------------------------------
def _vmem_capacity_bytes():
    try:
        cap = getattr(pltpu.get_tpu_info(), "vmem_capacity_bytes", None)
        if cap:
            return int(cap)
    except Exception:
        pass
    return 64 * 1024 * 1024        # conservative default (v7x per-TensorCore VMEM)


def _pick_tile_b(batch, num_classes, in_dtype):
    c_lanes = max(128, ((num_classes + 127) // 128) * 128)   # lane-padded width in VMEM
    in_bytes = jnp.dtype(in_dtype).itemsize
    # 2 logits inputs x 2 pipeline buffers + ~4 f32 working arrays the compiler
    # materialises per tile + double-buffered (tile_b, 1) i32 output block.
    bytes_per_row = c_lanes * (2 * 2 * in_bytes + 4 * 4) + 2 * 128 * 4
    budget = int(0.45 * _vmem_capacity_bytes())              # headroom for temporaries
    tile_b = (budget // bytes_per_row) // 8 * 8
    tile_b = max(8, min(tile_b, 1024, batch))
    while batch % tile_b:
        tile_b -= 8
    return tile_b


def flexdash_cross_entropy(logits_s, logits_w, y_buf, *, num_classes,
                           temperature, threshold, warmup, iteration,
                           tile_b=None, approx_reciprocal=False):
    B, C = logits_s.shape
    assert logits_w.shape == (B, C) and C == num_classes
    assert B % 8 == 0, "batch must be a multiple of 8"
    # TODO(synk): ragged batches would need wrapper-side padding with mask=0 rows.

    if tile_b is None:
        tile_b = _pick_tile_b(B, C, logits_s.dtype)
    assert B % tile_b == 0
    num_tiles = B // tile_b

    tau = jnp.reshape(compute_tau(num_classes, threshold, warmup, iteration), (1,))
    beta = compute_beta(y_buf, num_classes)[:num_classes].reshape(1, num_classes)

    kernel = _make_kernel(num_classes, temperature, threshold, approx_reciprocal)
    vmem_limit = int(min(0.9 * _vmem_capacity_bytes(), 128 * 1024 * 1024))

    loss_p, mu_p, yhat_state = pl.pallas_call(
        kernel,
        out_shape=(
            jax.ShapeDtypeStruct((num_tiles, 8, 128), jnp.float32),  # Σ ce*mask per tile
            jax.ShapeDtypeStruct((num_tiles, 8, 128), jnp.float32),  # Σ mask per tile
            jax.ShapeDtypeStruct((B, 1), jnp.int32),                 # new ŷ state
        ),
        grid_spec=pltpu.PrefetchScalarGridSpec(
            num_scalar_prefetch=0,
            grid=(num_tiles,),
            in_specs=[
                pl.BlockSpec(memory_space=pltpu.MemorySpace.SMEM),   # tau (runtime scalar)
                pl.BlockSpec((tile_b, C), lambda i: (i, 0)),         # logits_w (bf16 ok)
                pl.BlockSpec((tile_b, C), lambda i: (i, 0)),         # logits_s (bf16 ok)
                pl.BlockSpec((1, C), lambda i: (0, 0)),              # beta[0:C]
            ],
            out_specs=[
                pl.BlockSpec((1, 8, 128), lambda i: (i, 0, 0)),
                pl.BlockSpec((1, 8, 128), lambda i: (i, 0, 0)),
                pl.BlockSpec((tile_b, 1), lambda i: (i, 0)),
            ],
        ),
        compiler_params=pltpu.CompilerParams(
            dimension_semantics=("parallel",),
            vmem_limit_bytes=vmem_limit),
    )(tau, logits_w, logits_s, beta)

    inv_b = 1.0 / float(B)
    loss = jnp.sum(loss_p[:, 0, 0]) * inv_b
    mu = jnp.sum(mu_p[:, 0, 0]) * inv_b
    return loss, mu, yhat_state[:, 0]


# ----------------------------------------------------------------------------
# Pure-JAX reference (mirrors the PyTorch module's forward)
# ----------------------------------------------------------------------------
def reference(logits_s, logits_w, y_buf, *, num_classes, temperature,
              threshold, warmup, iteration):
    lw = logits_w.astype(jnp.float32)
    ls = logits_s.astype(jnp.float32)
    tau = compute_tau(num_classes, threshold, warmup, iteration)
    p = jax.nn.softmax(lw / temperature, axis=-1)
    conf = p.max(-1)
    yhat = p.argmax(-1)
    beta = compute_beta(y_buf, num_classes)
    mask = (conf > tau * beta[yhat]).astype(jnp.float32)
    logp = jax.nn.log_softmax(ls, axis=-1)
    loss = -jnp.take_along_axis(logp, yhat[:, None], axis=-1)[:, 0]
    yhat_state = jnp.where(conf > threshold, yhat, -1).astype(jnp.int32)
    return (loss * mask).mean(), mask.mean(), yhat_state


if __name__ == "__main__":
    num_classes = 48           # deliberately not a multiple of 128 (full-C blocks)
    num_samples = 512
    temperature = 0.5
    threshold = 0.95
    warmup = 10
    iteration = 3

    # Buffer init from __init__: Ŷ = [num_classes] * num_samples
    y_buf = jnp.full((num_samples,), num_classes, dtype=jnp.int32)

    key = jax.random.PRNGKey(0)
    k1, k2 = jax.random.split(key)
    # bf16 inputs from the "model": halves HBM traffic of this mem-bound kernel.
    logits_s = jax.random.normal(k1, (num_samples, num_classes), jnp.float32).astype(jnp.bfloat16)
    logits_w = jax.random.normal(k2, (num_samples, num_classes), jnp.float32).astype(jnp.bfloat16)

    cfg = dict(num_classes=num_classes, temperature=temperature,
               threshold=threshold, warmup=warmup, iteration=iteration)

    r_loss, r_mu, r_yhat = reference(logits_s, logits_w, y_buf, **cfg)

    # Run once with an explicit small tile (multi-step grid) and once with the
    # auto VMEM-budgeted tile; both must match the reference.
    for tb in (128, None):
        loss, mu, yhat_state = flexdash_cross_entropy(
            logits_s, logits_w, y_buf, tile_b=tb, **cfg)
        jax.block_until_ready((loss, mu, yhat_state))

        assert jnp.allclose(loss, r_loss, atol=1e-4, rtol=1e-4), (tb, loss, r_loss)
        assert jnp.allclose(mu, r_mu, atol=1e-6), (tb, mu, r_mu)
        assert jnp.array_equal(yhat_state, r_yhat), tb

    print("KERNEL_OK")
</pallas_src>

<mosaic_0001>
module attributes {stable_mosaic.version = 11 : i64} {
  func.func @kernel(%arg0: i32, %arg1: memref<1xf32, #tpu.memory_space<smem>>, %arg2: memref<128x48xbf16, #tpu.memory_space<vmem>>, %arg3: memref<128x48xbf16, #tpu.memory_space<vmem>>, %arg4: memref<1x48xf32, #tpu.memory_space<vmem>>, %arg5: memref<1x8x128xf32, #tpu.memory_space<vmem>>, %arg6: memref<1x8x128xf32, #tpu.memory_space<vmem>>, %arg7: memref<128x1xi32, #tpu.memory_space<vmem>>) attributes {dimension_semantics = [#tpu.dimension_semantics<parallel>], iteration_bounds = array<i64: 4>, scalar_prefetch = 0 : i64, scratch_operands = 0 : i64, tpu.core_type = #tpu.core_type<tc>, window_params = [{transform_indices = @transform_0, window_bounds = array<i64: 1>}, {transform_indices = @transform_1, window_bounds = array<i64: 128, 48>}, {transform_indices = @transform_2, window_bounds = array<i64: 128, 48>}, {pipeline_mode = #tpu.pipeline_mode<synchronous>, transform_indices = @transform_3, window_bounds = array<i64: 1, 48>}, {transform_indices = @transform_4, window_bounds = array<i64: 1, 8, 128>}, {transform_indices = @transform_5, window_bounds = array<i64: 1, 8, 128>}, {transform_indices = @transform_6, window_bounds = array<i64: 128, 1>}]} {
    %c0 = arith.constant 0 : index
    %0 = memref.load %arg1[%c0] : memref<1xf32, #tpu.memory_space<smem>>
    %c0_0 = arith.constant 0 : index
    %c0_1 = arith.constant 0 : index
    %1 = vector.load %arg2[%c0_0, %c0_1] : memref<128x48xbf16, #tpu.memory_space<vmem>>, vector<128x48xbf16>
    %2 = arith.extf %1 : vector<128x48xbf16> to vector<128x48xf32>
    %cst = arith.constant 2.000000e+00 : f32
    %3 = vector.broadcast %cst : f32 to vector<128x48xf32>
    %4 = arith.mulf %2, %3 : vector<128x48xf32>
    %cst_2 = arith.constant dense<0xFF800000> : vector<128xf32>
    %5 = vector.multi_reduction <maximumf>, %4, %cst_2 [1] : vector<128x48xf32> to vector<128xf32>
    %6 = vector.shape_cast %5 : vector<128xf32> to vector<128x1xf32>
    %7 = vector.broadcast %6 : vector<128x1xf32> to vector<128x48xf32>
    %8 = arith.subf %4, %7 : vector<128x48xf32>
    %9 = math.exp %8 : vector<128x48xf32>
    %cst_3 = arith.constant dense<0.000000e+00> : vector<128xf32>
    %10 = vector.multi_reduction <add>, %9, %cst_3 [1] : vector<128x48xf32> to vector<128xf32>
    %11 = vector.shape_cast %10 : vector<128xf32> to vector<128x1xf32>
    %12 = tpu.reciprocal %11 : vector<128x1xf32> -> vector<128x1xf32>
    %13 = tpu.iota {dimensions = array<i32: 1>} : vector<128x48xi32>
    %14 = vector.broadcast %6 : vector<128x1xf32> to vector<128x48xf32>
    %15 = arith.cmpf oge, %4, %14 : vector<128x48xf32>
    %c48_i32 = arith.constant 48 : i32
    %16 = vector.broadcast %c48_i32 : i32 to vector<128x48xi32>
    %17 = arith.select %15, %13, %16 : vector<128x48xi1>, vector<128x48xi32>
    %cst_4 = arith.constant dense<2147483647> : vector<128xi32>
    %18 = vector.multi_reduction <minsi>, %17, %cst_4 [1] : vector<128x48xi32> to vector<128xi32>
    %19 = vector.shape_cast %18 : vector<128xi32> to vector<128x1xi32>
    %20 = vector.broadcast %19 : vector<128x1xi32> to vector<128x48xi32>
    %21 = arith.cmpi eq, %13, %20 : vector<128x48xi32>
    %c0_5 = arith.constant 0 : index
    %c0_6 = arith.constant 0 : index
    %22 = vector.load %arg4[%c0_5, %c0_6] : memref<1x48xf32, #tpu.memory_space<vmem>>, vector<1x48xf32>
    %cst_7 = arith.constant 0.000000e+00 : f32
    %23 = vector.shape_cast %22 : vector<1x48xf32> to vector<1x48xf32>
    %24 = vector.broadcast %23 : vector<1x48xf32> to vector<128x48xf32>
    %25 = vector.broadcast %cst_7 : f32 to vector<128x48xf32>
    %26 = arith.select %21, %24, %25 : vector<128x48xi1>, vector<128x48xf32>
    %cst_8 = arith.constant dense<0.000000e+00> : vector<128xf32>
    %27 = vector.multi_reduction <add>, %26, %cst_8 [1] : vector<128x48xf32> to vector<128xf32>
    %28 = vector.shape_cast %27 : vector<128xf32> to vector<128x1xf32>
    %29 = vector.broadcast %0 : f32 to vector<128x1xf32>
    %30 = arith.mulf %29, %28 : vector<128x1xf32>
    %31 = arith.cmpf ogt, %12, %30 : vector<128x1xf32>
    %32 = arith.extui %31 : vector<128x1xi1> to vector<128x1xi32>
    %33 = arith.sitofp %32 : vector<128x1xi32> to vector<128x1xf32>
    %c0_9 = arith.constant 0 : index
    %c0_10 = arith.constant 0 : index
    %34 = vector.load %arg3[%c0_9, %c0_10] : memref<128x48xbf16, #tpu.memory_space<vmem>>, vector<128x48xbf16>
    %35 = arith.extf %34 : vector<128x48xbf16> to vector<128x48xf32>
    %cst_11 = arith.constant dense<0xFF800000> : vector<128xf32>
    %36 = vector.multi_reduction <maximumf>, %35, %cst_11 [1] : vector<128x48xf32> to vector<128xf32>
    %37 = vector.shape_cast %36 : vector<128xf32> to vector<128x1xf32>
    %38 = vector.broadcast %37 : vector<128x1xf32> to vector<128x48xf32>
    %39 = arith.subf %35, %38 : vector<128x48xf32>
    %40 = math.exp %39 : vector<128x48xf32>
    %cst_12 = arith.constant dense<0.000000e+00> : vector<128xf32>
    %41 = vector.multi_reduction <add>, %40, %cst_12 [1] : vector<128x48xf32> to vector<128xf32>
    %42 = vector.shape_cast %41 : vector<128xf32> to vector<128x1xf32>
    %43 = math.log %42 : vector<128x1xf32>
    %44 = arith.addf %37, %43 : vector<128x1xf32>
    %cst_13 = arith.constant 0.000000e+00 : f32
    %45 = vector.broadcast %cst_13 : f32 to vector<128x48xf32>
    %46 = arith.select %21, %35, %45 : vector<128x48xi1>, vector<128x48xf32>
    %cst_14 = arith.constant dense<0.000000e+00> : vector<128xf32>
    %47 = vector.multi_reduction <add>, %46, %cst_14 [1] : vector<128x48xf32> to vector<128xf32>
    %48 = vector.shape_cast %47 : vector<128xf32> to vector<128x1xf32>
    %49 = arith.subf %44, %48 : vector<128x1xf32>
    %50 = arith.mulf %49, %33 : vector<128x1xf32>
    %51 = vector.shape_cast %50 : vector<128x1xf32> to vector<1x128x1xf32>
    %cst_15 = arith.constant dense<0.000000e+00> : vector<1xf32>
    %52 = vector.multi_reduction <add>, %51, %cst_15 [1, 2] : vector<1x128x1xf32> to vector<1xf32>
    %53 = vector.shape_cast %52 : vector<1xf32> to vector<1x1x1xf32>
    %54 = vector.extract %53[0, 0, 0] : f32 from vector<1x1x1xf32>
    %55 = vector.broadcast %54 : f32 to vector<1x8x128xf32>
    %c0_16 = arith.constant 0 : index
    %c0_17 = arith.constant 0 : index
    %c0_18 = arith.constant 0 : index
    %56 = vector.load %arg5[%c0_16, %c0_17, %c0_18] : memref<1x8x128xf32, #tpu.memory_space<vmem>>, vector<1x8x128xf32>
    tpu.vector_store %arg5[%c0_16, %c0_17, %c0_18], %55 {strides = array<i32>} : memref<1x8x128xf32, #tpu.memory_space<vmem>>, vector<1x8x128xf32>,
    %57 = vector.shape_cast %33 : vector<128x1xf32> to vector<1x128x1xf32>
    %cst_19 = arith.constant dense<0.000000e+00> : vector<1xf32>
    %58 = vector.multi_reduction <add>, %57, %cst_19 [1, 2] : vector<1x128x1xf32> to vector<1xf32>
    %59 = vector.shape_cast %58 : vector<1xf32> to vector<1x1x1xf32>
    %60 = vector.extract %59[0, 0, 0] : f32 from vector<1x1x1xf32>
    %61 = vector.broadcast %60 : f32 to vector<1x8x128xf32>
    %c0_20 = arith.constant 0 : index
    %c0_21 = arith.constant 0 : index
    %c0_22 = arith.constant 0 : index
    %62 = vector.load %arg6[%c0_20, %c0_21, %c0_22] : memref<1x8x128xf32, #tpu.memory_space<vmem>>, vector<1x8x128xf32>
    tpu.vector_store %arg6[%c0_20, %c0_21, %c0_22], %61 {strides = array<i32>} : memref<1x8x128xf32, #tpu.memory_space<vmem>>, vector<1x8x128xf32>,
    %cst_23 = arith.constant 0.949999988 : f32
    %63 = vector.broadcast %cst_23 : f32 to vector<128x1xf32>
    %64 = arith.cmpf ogt, %12, %63 : vector<128x1xf32>
    %c-1_i32 = arith.constant -1 : i32
    %65 = vector.broadcast %c-1_i32 : i32 to vector<128x1xi32>
    %66 = arith.select %64, %19, %65 : vector<128x1xi1>, vector<128x1xi32>
    %c0_24 = arith.constant 0 : index
    %c0_25 = arith.constant 0 : index
    %67 = vector.load %arg7[%c0_24, %c0_25] : memref<128x1xi32, #tpu.memory_space<vmem>>, vector<128x1xi32>
    tpu.vector_store %arg7[%c0_24, %c0_25], %66 {strides = array<i32>} : memref<128x1xi32, #tpu.memory_space<vmem>>, vector<128x1xi32>,
    return
  }
  func.func @transform_0(%arg0: i32) -> i32 {
    %c0_i32 = arith.constant 0 : i32
    %c0_i32_0 = arith.constant 0 : i32
    return %c0_i32 : i32
  }
  func.func @transform_1(%arg0: i32) -> (i32, i32) {
    %c0_i32 = arith.constant 0 : i32
    %c0_i32_0 = arith.constant 0 : i32
    return %arg0, %c0_i32 : i32, i32
  }
  func.func @transform_2(%arg0: i32) -> (i32, i32) {
    %c0_i32 = arith.constant 0 : i32
    %c0_i32_0 = arith.constant 0 : i32
    return %arg0, %c0_i32 : i32, i32
  }
  func.func @transform_3(%arg0: i32) -> (i32, i32) {
    %c0_i32 = arith.constant 0 : i32
    %c0_i32_0 = arith.constant 0 : i32
    %c0_i32_1 = arith.constant 0 : i32
    return %c0_i32, %c0_i32_0 : i32, i32
  }
  func.func @transform_4(%arg0: i32) -> (i32, i32, i32) {
    %c0_i32 = arith.constant 0 : i32
    %c0_i32_0 = arith.constant 0 : i32
    %c0_i32_1 = arith.constant 0 : i32
    return %arg0, %c0_i32, %c0_i32_0 : i32, i32, i32
  }
  func.func @transform_5(%arg0: i32) -> (i32, i32, i32) {
    %c0_i32 = arith.constant 0 : i32
    %c0_i32_0 = arith.constant 0 : i32
    %c0_i32_1 = arith.constant 0 : i32
    return %arg0, %c0_i32, %c0_i32_0 : i32, i32, i32
  }
  func.func @transform_6(%arg0: i32) -> (i32, i32) {
    %c0_i32 = arith.constant 0 : i32
    %c0_i32_0 = arith.constant 0 : i32
    return %arg0, %c0_i32 : i32, i32
  }
}

</mosaic_0001>

<bundles_post_ra>
// kernel: tpu_custom_call.1
= control target key start
LH: loop header
LB: loop body
LE: loop exit
PB: predicated region body
PF: predicated region fallthrough
CT: control target
= control target key end

     0   :  { %s3133_s0 = inlined_call_operand.<no memory space> [shape: f32[1], index: 0, kind: input, shape index: {}]   ;;  %s3134_s1 = inlined_call_operand.vmem [shape: bf16[512,48], index: 1, kind: input, shape index: {}]   ;;  %s3135_s2 = inlined_call_operand.vmem [shape: bf16[512,48], index: 2, kind: input, shape index: {}]   ;;  %s3136_s3 = inlined_call_operand.vmem [shape: f32[1,48], index: 3, kind: input, shape index: {}]   ;;  %s3137_s4 = inlined_call_operand.hbm [shape: f32[4,8,128], index: 4, kind: output, shape index: {0}]   ;;  %s3138_s5 = inlined_call_operand.hbm [shape: f32[4,8,128], index: 5, kind: output, shape index: {1}]   ;;  %s3139_s6 = inlined_call_operand.vmem [shape: s32[512,1], index: 6, kind: output, shape index: {2}]  }
   0x1   :  { %12 = sst [smem:[#allocation2]] %s3133_s0 }
   0x2   :  { %13 = vsyncpa [#allocation4], 0 }
   0x3   :  { %15 = vsyncpa [#allocation4 + $0x1], 0 }
   0x4   :  { %16 = vsyncpa [#allocation6], 0 }
   0x5   :  { %18 = vsyncpa [#allocation6 + $0x1], 0  ;;  %s1984_s23 = smov 0   ;;  %s1986_s24 = smov 0  }
   0x6   :  { %s1988_s25 = smov 0   ;;  %s1990_s26 = smov 0  }
   0x7 LB: > { %s2005_s0 = sadd.s32 4294967295, %s1941_s26   ;;  %s1557_s27 = sadd.s32 4294967294, %s1941_s26   ;;  %s1941_s26 = sphi %s1990_s26, %s3286_s26   ;;  %s1937_s25 = sphi %s1988_s25, %s3285_s25   ;;  %s1933_s24 = sphi %s1986_s24, %s3284_s24   ;;  %s1929_s23 = sphi %s1984_s23, %s3283_s23  }
   0x8   : > { %s2009_s28 = sadd.s32 1, %s1941_s26   ;;  %s125_s29 = sadd.s32 1, %s1937_s25 }
   0x9   : > { %s122_s30 = ssub.s32 %s1941_s26, %s2009_s28  ;;  %p135_p0 = scmp.ne.s32.totalorder %s1937_s25, %s1933_s24 }
   0xa   : > { %p123_p1 = scmp.eq.s32.totalorder %s122_s30, 0  ;;  %p136_p2 = scmp.eq.s32.totalorder %s2005_s0, 3 }
   0xb   : > { %p141_p3 = scmp.ne.s32.totalorder %s1933_s24, %s1929_s23  ;;  %p142_p4 = scmp.eq.s32.totalorder %s1557_s27, 3 }
   0xc   : > { %s2020_s7 = scalar_select %p123_p1, %s1937_s25, %s125_s29  }
   0xd   : > { %p2022_p5 = por %p136_p2, %p135_p0  ;;  %p2026_p6 = por %p142_p4, %p141_p3 }
   0xe   : > { %p1560_p7 = scmp.ge.s32.totalorder %s1941_s26, 1  ;;  %p236_p8 = scmp.lt.s32.totalorder %s1941_s26, 5 }
  0x10   : > { %p237_p9 = pnand %p1560_p7, %p236_p8 }
  0x12   : > { %240 = sbr.rel (%p237_p9) target bundleno = 937 (0x3a9), region = 36 }
  0x19   : > { %s1563_s10 = sshll.u32 %s2005_s0, 4  ;;  %vm348_vm0 = vcmask 392192   ;;  %s299_s29 = sld [smem:[#allocation2]] }
  0x1a   : > { %p282_p10 = scmp.lt.s32.totalorder %s1563_s10, 63  ;;  %s3054_s30 = sand.u32 1, %s1933_s24  }
  0x1b   : > { %s1588_s15 = sshll.u32 %s2005_s0, 7  ;;  %s1389_s0 = scalar_lea.sflag [#allocation4], %s3054_s30 }
  0x1c   : > { %s3288_s10 = smov (!%p282_p10, %s1563_s10), 63  ;;  %s3070_s27 = scalar_lea.hbm %s3138_s5, %s1588_s15 }
  0x1d   : > { %s1564_s11 = sshll.u32 %s3288_s10, 2  ;;  %s1568_s18 = sshll.u32 %s3288_s10, 3 }
  0x1e   : > { %s2041_s14 = scalar_lea.vmem %s3134_s1, %s1564_s11  ;;  %s2108_s17 = scalar_lea.vmem %s3135_s2, %s1564_s11 }
  0x1f   : > { %v1656_v0 = vld [vmem:[%s2041_s14 + $0x8] sm:$0xff]   ;;  %v1593_v1 = vld [vmem:[%s2041_s14] sm:$0xff]   ;;  %v1657_v2 = vld [vmem:[%s2041_s14 + $0x10] sm:$0xff]   ;;  %s2633_s21 = scalar_lea.vmem %s3139_s6, %s1568_s18  ;;  %s1561_s10 = sshll.u32 %s3054_s30, 3 }
  0x20   : > { %v1598_v3 = vunpack.c.l.bf16 %v1656_v0  ;;  %v1594_v4 = vunpack.c.l.bf16 %v1593_v1  ;;  %v1599_v5 = vunpack.c.h.bf16 %v1656_v0  ;;  %v1595_v6 = vunpack.c.h.bf16 %v1593_v1  ;;  %v1658_v13 = vld [vmem:[%s2041_s14 + $0x18] sm:$0xff]   ;;  %v1659_v22 = vld [vmem:[%s2041_s14 + $0x20] sm:$0xff]   ;;  %v1660_v29 = vld [vmem:[%s2041_s14 + $0x28] sm:$0xff]   ;;  %s273_s11 = scalar_lea.vmem [#allocation5], %s1561_s10  ;;  %s266_s13 = scalar_lea.vmem [#allocation3], %s1561_s10 }
  0x21   : > { %v1603_v7 = vunpack.c.h.bf16 %v1657_v2  ;;  %v1602_v8 = vunpack.c.l.bf16 %v1657_v2  ;;  %v1607_v16 = vunpack.c.h.bf16 %v1658_v13  ;;  %v1606_v17 = vunpack.c.l.bf16 %v1658_v13  ;;  %v1661_v36 = vld [vmem:[%s2041_s14 + $0x30] sm:$0xff]   ;;  %v1662_v43 = vld [vmem:[%s2041_s14 + $0x38] sm:$0xff]   ;;  %v1625_v54 = vld [vmem:[%s2108_s17] sm:$0xff]   ;;  %s1425_s12 = sshll.u32 %s273_s11, 4  ;;  %s1412_s14 = sshll.u32 %s266_s13, 4  ;;  %s3058_s12 = int_to_ptr.vmem [resolvable:$true] %s1425_s12  ;;  %s3065_s14 = int_to_ptr.vmem [resolvable:$true] %s1412_s14 }
  0x22   : > { %v2046_v9 = vmul.f32 2.0, %v1598_v3  ;;  %v2048_v10 = vmul.f32 2.0, %v1594_v4  ;;  %v2050_v11 = vmul.f32 2.0, %v1599_v5  ;;  %v2052_v12 = vmul.f32 2.0, %v1595_v6  ;;  %v1663_v59 = vld [vmem:[%s2108_s17 + $0x8] sm:$0xff]   ;;  %v1664_v0 = vld [vmem:[%s2108_s17 + $0x10] sm:$0xff]   ;;  %s3063_s18 = scalar_lea.hbm %s3137_s4, %s1588_s15 }
  0x23   : > { %v2063_v20 = vmul.f32 2.0, %v1603_v7  ;;  %v2065_v21 = vmul.f32 2.0, %v1602_v8  ;;  %v2068_v23 = vmul.f32 2.0, %v1607_v16  ;;  %v2070_v24 = vmul.f32 2.0, %v1606_v17  ;;  %v1665_v5 = vld [vmem:[%s2108_s17 + $0x18] sm:$0xff]   ;;  %s1944_s10 = smov [#allocation3]  }
  0x24   : > { %v355_v14 = vsel %vm348_vm0, %v2046_v9, -inf  ;;  %v349_v15 = vsel %vm348_vm0, %v2048_v10, -inf  ;;  %v358_v18 = vsel %vm348_vm0, %v2050_v11, -inf  ;;  %v352_v19 = vsel %vm348_vm0, %v2052_v12, -inf  ;;  %s1851_s16 = sshll.u32 %s1944_s10, 4  ;;  %s1852_s16 = int_to_ptr.vmem [resolvable:$false] %s1851_s16 }
  0x25   : > { %356 = vmax.xlane.f32.xlu1 %v355_v14  ;;  %350 = vmax.xlane.f32.xlu0 %v349_v15  ;;  %v364_v25 = vsel %vm348_vm0, %v2063_v20, -inf  ;;  %v361_v26 = vsel %vm348_vm0, %v2065_v21, -inf  ;;  %v1611_v27 = vunpack.c.h.bf16 %v1659_v22  ;;  %v1610_v28 = vunpack.c.l.bf16 %v1659_v22  ;;  %v1666_v14 = vld [vmem:[%s2108_s17 + $0x20] sm:$0xff]   ;;  %p1854_p0 = scmp.lt.s32.totalorder %s3065_s14, %s1852_s16 }
  0x26   : > { %v370_v30 = vsel %vm348_vm0, %v2068_v23, -inf  ;;  %v367_v31 = vsel %vm348_vm0, %v2070_v24, -inf  ;;  %v1615_v34 = vunpack.c.h.bf16 %v1660_v29  ;;  %v1614_v35 = vunpack.c.l.bf16 %v1660_v29 }
  0x27   : > { %v2081_v32 = vmul.f32 2.0, %v1611_v27  ;;  %v2083_v33 = vmul.f32 2.0, %v1610_v28  ;;  %v1619_v37 = vunpack.c.h.bf16 %v1661_v36  ;;  %v1618_v38 = vunpack.c.l.bf16 %v1661_v36  ;;  %v1668_v28 = vld [vmem:[%s2108_s17 + $0x30] sm:$0xff]   ;;  %v2184_v36 = vld [vmem:[%s2108_s17 + $0x38] sm:$0xff]  }
  0x28   : > { %v2090_v41 = vmul.f32 2.0, %v1615_v34  ;;  %v2092_v42 = vmul.f32 2.0, %v1614_v35  ;;  %v1623_v44 = vunpack.c.h.bf16 %v1662_v43  ;;  %v1622_v45 = vunpack.c.l.bf16 %v1662_v43 }
  0x29   : > { %359 = vmax.xlane.f32.xlu1 %v358_v18  ;;  %353 = vmax.xlane.f32.xlu0 %v352_v19  ;;  %v376_v39 = vsel %vm348_vm0, %v2081_v32, -inf  ;;  %v373_v40 = vsel %vm348_vm0, %v2083_v33, -inf  ;;  %v2099_v48 = vmul.f32 2.0, %v1619_v37  ;;  %v2101_v49 = vmul.f32 2.0, %v1618_v38  ;;  %v1667_v19 = vld [vmem:[%s2108_s17 + $0x28] sm:$0xff]   ;;  %s1853_s17 = scalar_lea.vmem %s1852_s16, 256 }
  0x2a   : > { %3191 = vst [vmem:[#allocation9_spill] sm:$0xff] %v2090_v41  ;;  %3192 = vst [vmem:[#allocation10_spill] sm:$0xff] %v2092_v42  ;;  %v382_v46 = vsel %vm348_vm0, %v2090_v41, -inf  ;;  %v379_v47 = vsel %vm348_vm0, %v2092_v42, -inf  ;;  %v2114_v52 = vmul.f32 2.0, %v1623_v44  ;;  %v2116_v53 = vmul.f32 2.0, %v1622_v45 }
  0x2b   : > { %3193 = vst [vmem:[#allocation11_spill] sm:$0xff] %v2099_v48  ;;  %3194 = vst [vmem:[#allocation12_spill] sm:$0xff] %v2101_v49  ;;  %v388_v50 = vsel %vm348_vm0, %v2099_v48, -inf  ;;  %v385_v51 = vsel %vm348_vm0, %v2101_v49, -inf  ;;  %v2123_v57 = vunpack.c.h.bf16 %v1625_v54  ;;  %v2125_v58 = vunpack.c.l.bf16 %v1625_v54 }
  0x2c   : > { %3195 = vst [vmem:[#allocation13_spill] sm:$0xff] %v2114_v52  ;;  %3196 = vst [vmem:[#allocation14_spill] sm:$0xff] %v2116_v53  ;;  %v394_v55 = vsel %vm348_vm0, %v2114_v52, -inf  ;;  %v391_v56 = vsel %vm348_vm0, %v2116_v53, -inf  ;;  %v2132_v62 = vunpack.c.h.bf16 %v1663_v59  ;;  %v2134_v63 = vunpack.c.l.bf16 %v1663_v59 }
  0x2d   : > { %365 = vmax.xlane.f32.xlu1 %v364_v25  ;;  %362 = vmax.xlane.f32.xlu0 %v361_v26  ;;  %3197 = vst [vmem:[#allocation15_spill] sm:$0xff] %v2123_v57  ;;  %3198 = vst [vmem:[#allocation16_spill] sm:$0xff] %v2125_v58  ;;  %v970_v60 = vsel %vm348_vm0, %v2123_v57, -inf  ;;  %v967_v61 = vsel %vm348_vm0, %v2125_v58, -inf  ;;  %v2141_v3 = vunpack.c.h.bf16 %v1664_v0  ;;  %v2143_v4 = vunpack.c.l.bf16 %v1664_v0 }
  0x2e   : > { %3199 = vst [vmem:[#allocation17_spill] sm:$0xff] %v2132_v62  ;;  %v976_v1 = vsel %vm348_vm0, %v2132_v62, -inf  ;;  %v973_v2 = vsel %vm348_vm0, %v2134_v63, -inf  ;;  %v2150_v8 = vunpack.c.h.bf16 %v1665_v5  ;;  %v2152_v13 = vunpack.c.l.bf16 %v1665_v5 }
  0x2f   : > { %3200 = vst [vmem:[#allocation18_spill] sm:$0xff] %v2141_v3  ;;  %3201 = vst [vmem:[#allocation19_spill] sm:$0xff] %v2143_v4  ;;  %v982_v6 = vsel %vm348_vm0, %v2141_v3, -inf  ;;  %v979_v7 = vsel %vm348_vm0, %v2143_v4, -inf  ;;  %v2159_v17 = vunpack.c.h.bf16 %v1666_v14  ;;  %v2161_v18 = vunpack.c.l.bf16 %v1666_v14 }
  0x30   : > { %3202 = vst [vmem:[#allocation20_spill] sm:$0xff] %v2150_v8  ;;  %3203 = vst [vmem:[#allocation21_spill] sm:$0xff] %v2152_v13  ;;  %v988_v15 = vsel %vm348_vm0, %v2150_v8, -inf  ;;  %v985_v16 = vsel %vm348_vm0, %v2152_v13, -inf  ;;  %v2168_v26 = vunpack.c.l.bf16 %v1667_v19  ;;  %v2170_v27 = vunpack.c.h.bf16 %v1667_v19 }
  0x31   : > { %371 = vmax.xlane.f32.xlu1 %v370_v30  ;;  %368 = vmax.xlane.f32.xlu0 %v367_v31  ;;  %v994_v22 = vsel %vm348_vm0, %v2159_v17, -inf  ;;  %v991_v25 = vsel %vm348_vm0, %v2161_v18, -inf  ;;  %v2175_v30 = vunpack.c.l.bf16 %v1668_v28  ;;  %v2181_v35 = vunpack.c.h.bf16 %v1668_v28 }
  0x32   : > { %v997_v29 = vsel %vm348_vm0, %v2168_v26, -inf  ;;  %v1000_v31 = vsel %vm348_vm0, %v2170_v27, -inf  ;;  %v2189_v38 = vunpack.c.l.bf16 %v2184_v36 }
  0x33   : > { %v1003_v34 = vsel %vm348_vm0, %v2175_v30, -inf  ;;  %3204 = vst [vmem:[#allocation22_spill] sm:$0xff] %v2181_v35  ;;  %v1006_v37 = vsel %vm348_vm0, %v2181_v35, -inf }
  0x34   : > { %3205 = vst [vmem:[#allocation23_spill] sm:$0xff] %v2189_v38 }
  0x35   : > { %377 = vmax.xlane.f32.xlu1 %v376_v39  ;;  %374 = vmax.xlane.f32.xlu0 %v373_v40  ;;  %v1009_v39 = vsel %vm348_vm0, %v2189_v38, -inf  ;;  %v509_v40 = vlaneseq }
  0x37   : > { %v2193_v43 = vand.u32 127, %v509_v40 }
  0x39   : > { %383 = vmax.xlane.f32.xlu1 %v382_v46  ;;  %380 = vmax.xlane.f32.xlu0 %v379_v47  ;;  %3206 = vst [vmem:[#allocation24_spill] sm:$0xff] %v2193_v43 }
  0x3d   : > { %389 = vmax.xlane.f32.xlu1 %v388_v50  ;;  %386 = vmax.xlane.f32.xlu0 %v385_v51 }
  0x41   : > { %395 = vmax.xlane.f32.xlu1 %v394_v55  ;;  %392 = vmax.xlane.f32.xlu0 %v391_v56 }
  0x45   : > { %971 = vmax.xlane.f32.xlu1 %v970_v60  ;;  %968 = vmax.xlane.f32.xlu0 %v967_v61 }
  0x49   : > { %977 = vmax.xlane.f32.xlu1 %v976_v1  ;;  %974 = vmax.xlane.f32.xlu0 %v973_v2 }
  0x4d   : > { %983 = vmax.xlane.f32.xlu1 %v982_v6  ;;  %980 = vmax.xlane.f32.xlu0 %v979_v7 }
  0x51   : > { %989 = vmax.xlane.f32.xlu1 %v988_v15  ;;  %986 = vmax.xlane.f32.xlu0 %v985_v16 }
  0x55   : > { %995 = vmax.xlane.f32.xlu1 %v994_v22  ;;  %992 = vmax.xlane.f32.xlu0 %v991_v25 }
  0x59   : > { %998 = vmax.xlane.f32.xlu0 %v997_v29  ;;  %1001 = vmax.xlane.f32.xlu1 %v1000_v31 }
  0x5d   : > { %1004 = vmax.xlane.f32.xlu0 %v1003_v34 }
  0x61   : > { %1007 = vmax.xlane.f32.xlu0 %v1006_v37 }
  0x65   : > { %1010 = vmax.xlane.f32.xlu0 %v1009_v39 }
  0xb2   : > { %v2195_v44 = vpop.xlane.xlu1 %356  ;;  %v2197_v45 = vpop.xlane.xlu0 %350 }
  0xb3   : > { %vm513_vm1 = vcmp.ge.f32.partialorder %v2046_v9, %v2195_v44  ;;  %vm511_vm2 = vcmp.ge.f32.partialorder %v2048_v10, %v2197_v45 }
  0xb4   : > { %v527_v46 = vsel %vm511_vm2, %v2193_v43, 48  ;;  %v529_v47 = vsel %vm513_vm1, %v2193_v43, 48 }
  0xb5   : > { %v2206_v50 = vsel %vm348_vm0, %v527_v46, 2147483647  ;;  %v2214_v56 = vsel %vm348_vm0, %v529_v47, 2147483647 }
  0xb6   : > { %v2208_v51 = vpop.xlane.xlu1 %359  ;;  %v2210_v54 = vpop.xlane.xlu0 %353  ;;  %v545_v55 = vshra.s32 %v2206_v50, 16  ;;  %v575_v60 = vshra.s32 %v2214_v56, 16 }
  0xb7   : > { %vm514_vm3 = vcmp.ge.f32.partialorder %v2050_v11, %v2208_v51  ;;  %vm512_vm4 = vcmp.ge.f32.partialorder %v2052_v12, %v2210_v54 }
  0xb8   : > { %v2220_v59 = vcvt.s32.f32 %v545_v55  ;;  %v528_v61 = vsel %vm512_vm4, %v2193_v43, 48  ;;  %v530_v0 = vsel %vm514_vm3, %v2193_v43, 48  ;;  %v2230_v5 = vcvt.s32.f32 %v575_v60 }
  0xb9   : > { %v2233_v6 = vsel %vm348_vm0, %v528_v61, 2147483647  ;;  %v2236_v7 = vsel %vm348_vm0, %v530_v0, 2147483647 }
  0xba   : > { %v2225_v1 = vpop.xlane.xlu1 %365  ;;  %548 = vmin.xlane.f32.xlu0 %v2220_v59  ;;  %v2228_v2 = vpop.xlane.xlu0 %362  ;;  %v560_v14 = vshra.s32 %v2233_v6, 16  ;;  %v590_v15 = vshra.s32 %v2236_v7, 16 }
  0xbb   : > { %vm516_vm5 = vcmp.ge.f32.partialorder %v2063_v20, %v2225_v1  ;;  %vm515_vm6 = vcmp.ge.f32.partialorder %v2065_v21, %v2228_v2 }
  0xbc   : > { %v531_v16 = vsel %vm515_vm6, %v2193_v43, 48  ;;  %v532_v19 = vsel %vm516_vm5, %v2193_v43, 48  ;;  %v2249_v25 = vcvt.s32.f32 %v560_v14  ;;  %v2264_v34 = vcvt.s32.f32 %v590_v15 }
  0xbd   : > { %v2254_v29 = vsel %vm348_vm0, %v531_v16, 2147483647  ;;  %v2257_v31 = vsel %vm348_vm0, %v532_v19, 2147483647 }
  0xbe   : > { %v2246_v22 = vpop.xlane.xlu1 %371  ;;  %578 = vmin.xlane.f32.xlu0 %v2230_v5  ;;  %v2251_v28 = vpop.xlane.xlu0 %368  ;;  %3207 = vst [vmem:[#allocation25_spill] sm:$0xff] %v2257_v31  ;;  %563 = vmin.xlane.f32.xlu1 %v2249_v25  ;;  %v605_v37 = vshra.s32 %v2254_v29, 16  ;;  %v620_v39 = vshra.s32 %v2257_v31, 16 }
  0xbf   : > { %vm518_vm7 = vcmp.ge.f32.partialorder %v2068_v23, %v2246_v22  ;;  %vm517_vm8 = vcmp.ge.f32.partialorder %v2070_v24, %v2251_v28 }
  0xc0   : > { %v533_v40 = vsel %vm517_vm8, %v2193_v43, 48  ;;  %v534_v46 = vsel %vm518_vm7, %v2193_v43, 48  ;;  %v2272_v55 = vcvt.s32.f32 %v605_v37  ;;  %v2288_v14 = vcvt.s32.f32 %v620_v39 }
  0xc1   : > { %v2277_v61 = vsel %vm348_vm0, %v533_v40, 2147483647  ;;  %v2280_v0 = vsel %vm348_vm0, %v534_v46, 2147483647 }
  0xc2   : > { %v2270_v47 = vpop.xlane.xlu1 %377  ;;  %3208 = vst [vmem:[#allocation26_spill] sm:$0xff] %v2272_v55  ;;  %v2274_v60 = vpop.xlane.xlu0 %374  ;;  %3209 = vst [vmem:[#allocation27_spill] sm:$0xff] %v2280_v0  ;;  %593 = vmin.xlane.f32.xlu1 %v2264_v34  ;;  %608 = vmin.xlane.f32.xlu0 %v2272_v55  ;;  %v635_v15 = vshra.s32 %v2277_v61, 16  ;;  %v650_v16 = vshra.s32 %v2280_v0, 16 }
  0xc3   : > { %vm520_vm9 = vcmp.ge.f32.partialorder %v2081_v32, %v2270_v47  ;;  %vm519_vm10 = vcmp.ge.f32.partialorder %v2083_v33, %v2274_v60  ;;  %3210 = vst [vmem:[#allocation28_spill] sm:$0xff] %v2288_v14 }
  0xc4   : > { %v535_v19 = vsel %vm519_vm10, %v2193_v43, 48  ;;  %v536_v37 = vsel %vm520_vm9, %v2193_v43, 48  ;;  %v2296_v46 = vcvt.s32.f32 %v635_v15  ;;  %v2312_v15 = vcvt.s32.f32 %v650_v16 }
  0xc5   : > { %v2301_v35 = vsel %vm348_vm0, %v535_v19, 2147483647  ;;  %v2304_v39 = vsel %vm348_vm0, %v536_v37, 2147483647 }
  0xc6   : > { %v2294_v40 = vpop.xlane.xlu1 %383  ;;  %v2298_v38 = vpop.xlane.xlu0 %380  ;;  %3213 = vst [vmem:[#allocation31_spill] sm:$0xff] %v2304_v39  ;;  %623 = vmin.xlane.f32.xlu1 %v2288_v14  ;;  %638 = vmin.xlane.f32.xlu0 %v2296_v46  ;;  %3214 = vst [vmem:[#allocation32_spill] sm:$0xff] %v2312_v15  ;;  %v665_v0 = vshra.s32 %v2301_v35, 16  ;;  %v680_v19 = vshra.s32 %v2304_v39, 16 }
  0xc7   : > { %3211 = vst [vmem:[#allocation29_spill] sm:$0xff] %v2294_v40  ;;  %3212 = vst [vmem:[#allocation30_spill] sm:$0xff] %v2298_v38  ;;  %vm522_vm11 = vcmp.ge.f32.partialorder %v2090_v41, %v2294_v40  ;;  %vm521_vm12 = vcmp.ge.f32.partialorder %v2092_v42, %v2298_v38 }
  0xc8   : > { %v537_v31 = vsel %vm521_vm12, %v2193_v43, 48  ;;  %v538_v37 = vsel %vm522_vm11, %v2193_v43, 48  ;;  %v2320_v41 = vcvt.s32.f32 %v665_v0  ;;  %v2336_v0 = vcvt.s32.f32 %v680_v19 }
  0xc9   : > { %v2325_v14 = vsel %vm348_vm0, %v537_v31, 2147483647  ;;  %v2328_v16 = vsel %vm348_vm0, %v538_v37, 2147483647 }
  0xca   : > { %v2318_v55 = vpop.xlane.xlu1 %389  ;;  %v2322_v40 = vpop.xlane.xlu0 %386  ;;  %3217 = vst [vmem:[#allocation35_spill] sm:$0xff] %v2328_v16  ;;  %653 = vmin.xlane.f32.xlu1 %v2312_v15  ;;  %668 = vmin.xlane.f32.xlu0 %v2320_v41  ;;  %3218 = vst [vmem:[#allocation36_spill] sm:$0xff] %v2336_v0  ;;  %v695_v42 = vshra.s32 %v2325_v14, 16  ;;  %v710_v31 = vshra.s32 %v2328_v16, 16 }
  0xcb   : > { %3215 = vst [vmem:[#allocation33_spill] sm:$0xff] %v2318_v55  ;;  %3216 = vst [vmem:[#allocation34_spill] sm:$0xff] %v2322_v40  ;;  %vm524_vm13 = vcmp.ge.f32.partialorder %v2099_v48, %v2318_v55  ;;  %vm523_vm14 = vcmp.ge.f32.partialorder %v2101_v49, %v2322_v40 }
  0xcc   : > { %v539_v38 = vsel %vm523_vm14, %v2193_v43, 48  ;;  %v540_v37 = vsel %vm524_vm13, %v2193_v43, 48  ;;  %v2344_v48 = vcvt.s32.f32 %v695_v42  ;;  %v2360_v42 = vcvt.s32.f32 %v710_v31 }
  0xcd   : > { %v2349_v15 = vsel %vm348_vm0, %v539_v38, 2147483647  ;;  %v2352_v19 = vsel %vm348_vm0, %v540_v37, 2147483647 }
  0xce   : > { %v2342_v39 = vpop.xlane.xlu1 %395  ;;  %3220 = vst [vmem:[#allocation38_spill] sm:$0xff] %v2344_v48  ;;  %v2346_v55 = vpop.xlane.xlu0 %392  ;;  %3222 = vst [vmem:[#allocation40_spill] sm:$0xff] %v2349_v15  ;;  %683 = vmin.xlane.f32.xlu1 %v2336_v0  ;;  %698 = vmin.xlane.f32.xlu0 %v2344_v48  ;;  %v725_v49 = vshra.s32 %v2349_v15, 16  ;;  %v740_v38 = vshra.s32 %v2352_v19, 16  ;;  %v2391_v15 = vunpack.c.h.bf16 %v2184_v36 }
  0xcf   : > { %3219 = vst [vmem:[#allocation37_spill] sm:$0xff] %v2342_v39  ;;  %3221 = vst [vmem:[#allocation39_spill] sm:$0xff] %v2346_v55  ;;  %vm526_vm15 = vcmp.ge.f32.partialorder %v2114_v52, %v2342_v39  ;;  %vm525_vm1 = vcmp.ge.f32.partialorder %v2116_v53, %v2346_v55 }
  0xd0   : > { %3223 = vst [vmem:[#allocation41_spill] sm:$0xff] %v2352_v19  ;;  %v541_v40 = vsel %vm525_vm1, %v2193_v43, 48  ;;  %v542_v37 = vsel %vm526_vm15, %v2193_v43, 48  ;;  %v2368_v52 = vcvt.s32.f32 %v725_v49  ;;  %v2385_v49 = vcvt.s32.f32 %v740_v38 }
  0xd1   : > { %v2373_v0 = vsel %vm348_vm0, %v541_v40, 2147483647  ;;  %v2376_v31 = vsel %vm348_vm0, %v542_v37, 2147483647 }
  0xd2   : > { %v2366_v16 = vpop.xlane.xlu1 %971  ;;  %v2370_v39 = vpop.xlane.xlu0 %968  ;;  %v755_v43 = vshra.s32 %v2373_v0, 16  ;;  %713 = vmin.xlane.f32.xlu1 %v2360_v42  ;;  %728 = vmin.xlane.f32.xlu0 %v2368_v52  ;;  %v770_v40 = vshra.s32 %v2376_v31, 16 }
  0xd3   : > { %3224 = vst [vmem:[#allocation42_spill] sm:$0xff] %v2366_v16  ;;  %3225 = vst [vmem:[#allocation43_spill] sm:$0xff] %v2370_v39  ;;  %v1016_v53 = vsub.f32 %v2123_v57, %v2366_v16  ;;  %v1015_v55 = vsub.f32 %v2125_v58, %v2370_v39 }
  0xd4   : > { %v2388_v37 = vcvt.s32.f32 %v755_v43 }
  0xd5   : > { %v1033_v19 = vmul.f32 1.442695, %v1016_v53  ;;  %v1031_v48 = vmul.f32 1.442695, %v1015_v55  ;;  %v2403_v53 = vcvt.s32.f32 %v770_v40  ;;  %v1012_v55 = vsel %vm348_vm0, %v2391_v15, -inf }
  0xd6   : > { %v2393_v16 = vpop.xlane.xlu1 %977  ;;  %v2395_v39 = vpop.xlane.xlu0 %974  ;;  %743 = vmin.xlane.f32.xlu1 %v2385_v49  ;;  %758 = vmin.xlane.f32.xlu0 %v2388_v37 }
  0xd7   : > { %3226 = vst [vmem:[#allocation44_spill] sm:$0xff] %v2393_v16  ;;  %3227 = vst [vmem:[#allocation45_spill] sm:$0xff] %v2395_v39  ;;  %1719 = vpow2.f32 %v1033_v19  ;;  %v1018_v57 = vsub.f32 %v2132_v62, %v2393_v16  ;;  %v1017_v38 = vsub.f32 %v2134_v63, %v2395_v39 }
  0xd8   : > { %1721 = vpow2.f32 %v1031_v48 }
  0xd9   : > { %v1037_v36 = vmul.f32 1.442695, %v1018_v57  ;;  %v1035_v43 = vmul.f32 1.442695, %v1017_v38 }
  0xda   : > { %v2407_v58 = vpop.xlane.xlu1 %983  ;;  %v2409_v19 = vpop.xlane.xlu0 %980  ;;  %773 = vmin.xlane.f32.xlu1 %v2403_v53  ;;  %1013 = vmax.xlane.f32.xlu0 %v1012_v55 }
  0xdb   : > { %3228 = vst [vmem:[#allocation46_spill] sm:$0xff] %v2407_v58  ;;  %3229 = vst [vmem:[#allocation47_spill] sm:$0xff] %v2409_v19  ;;  %1723 = vpow2.f32 %v1037_v36  ;;  %v1020_v16 = vsub.f32 %v2141_v3, %v2407_v58  ;;  %v1019_v48 = vsub.f32 %v2143_v4, %v2409_v19 }
  0xdc   : > { %1725 = vpow2.f32 %v1035_v43 }
  0xdd   : > { %v1041_v57 = vmul.f32 1.442695, %v1020_v16  ;;  %v1039_v40 = vmul.f32 1.442695, %v1019_v48 }
  0xde   : > { %v2416_v38 = vpop.xlane.xlu1 %989  ;;  %v2418_v39 = vpop.xlane.xlu0 %986 }
  0xdf   : > { %3230 = vst [vmem:[#allocation48_spill] sm:$0xff] %v2416_v38  ;;  %3231 = vst [vmem:[#allocation49_spill] sm:$0xff] %v2418_v39  ;;  %1727 = vpow2.f32 %v1041_v57  ;;  %v1021_v36 = vsub.f32 %v2152_v13, %v2418_v39  ;;  %v1022_v58 = vsub.f32 %v2150_v8, %v2416_v38  ;;  %v398_v38 = vsub.f32 %v2052_v12, %v2210_v54 }
  0xe0   : > { %1729 = vpow2.f32 %v1039_v40  ;;  %v399_v12 = vsub.f32 %v2046_v9, %v2195_v44  ;;  %v404_v44 = vsub.f32 %v2068_v23, %v2246_v22  ;;  %v402_v22 = vsub.f32 %v2063_v20, %v2225_v1 }
  0xe1   : > { %v1720_v3 = vpop.eup %1719  ;;  %v1043_v19 = vmul.f32 1.442695, %v1021_v36  ;;  %v1045_v39 = vmul.f32 1.442695, %v1022_v58  ;;  %v415_v54 = vmul.f32 1.442695, %v398_v38 }
  0xe2   : > { %v1722_v43 = vpop.eup %1721  ;;  %v2424_v4 = vpop.xlane.xlu1 %995  ;;  %v1066_v16 = vsel %vm348_vm0, %v1720_v3, 0.0 }
  0xe3   : > { %v2426_v55 = vpop.xlane.xlu0 %992  ;;  %v1024_v48 = vsub.f32 %v2159_v17, %v2424_v4  ;;  %1067 = vadd.xlane.f32.xlu1 %v1066_v16  ;;  %v1063_v57 = vsel %vm348_vm0, %v1722_v43, 0.0  ;;  %1731 = vpow2.f32 %v1043_v19 }
  0xe4   : > { %v1023_v40 = vsub.f32 %v2161_v18, %v2426_v55  ;;  %1064 = vadd.xlane.f32.xlu0 %v1063_v57 }
  0xe5   : > { %v1724_v36 = vpop.eup %1723  ;;  %v1049_v8 = vmul.f32 1.442695, %v1024_v48 }
  0xe6   : > { %v1726_v13 = vpop.eup %1725  ;;  %v1072_v3 = vsel %vm348_vm0, %v1724_v36, 0.0  ;;  %v1047_v19 = vmul.f32 1.442695, %v1023_v40  ;;  %v397_v36 = vsub.f32 %v2048_v10, %v2197_v45  ;;  %v401_v45 = vsub.f32 %v2065_v21, %v2228_v2 }
  0xe7   : > { %v2436_v62 = vpop.xlane.xlu0 %998  ;;  %1733 = vpow2.f32 %v1049_v8  ;;  %1073 = vadd.xlane.f32.xlu1 %v1072_v3  ;;  %v1069_v58 = vsel %vm348_vm0, %v1726_v13, 0.0  ;;  %v417_v3 = vmul.f32 1.442695, %v399_v12  ;;  %v400_v13 = vsub.f32 %v2050_v11, %v2208_v51 }
  0xe8   : > { %v1025_v43 = vsub.f32 %v2168_v26, %v2436_v62  ;;  %1735 = vpow2.f32 %v1045_v39  ;;  %1070 = vadd.xlane.f32.xlu0 %v1069_v58  ;;  %v413_v9 = vmul.f32 1.442695, %v397_v36  ;;  %v427_v11 = vmul.f32 1.442695, %v404_v44 }
  0xe9   : > { %v1728_v16 = vpop.eup %1727  ;;  %v419_v10 = vmul.f32 1.442695, %v400_v13  ;;  %v405_v51 = vsub.f32 %v2083_v33, %v2274_v60  ;;  %v406_v12 = vsub.f32 %v2081_v32, %v2270_v47 }
  0xea   : > { %v1051_v48 = vmul.f32 1.442695, %v1025_v43  ;;  %v1730_v57 = vpop.eup %1729  ;;  %v1078_v39 = vsel %vm348_vm0, %v1728_v16, 0.0  ;;  %v421_v16 = vmul.f32 1.442695, %v401_v45 }
  0xeb   : > { %v1075_v8 = vsel %vm348_vm0, %v1730_v57, 0.0  ;;  %v403_v57 = vsub.f32 %v2070_v24, %v2251_v28  ;;  %v431_v1 = vmul.f32 1.442695, %v406_v12 }
  0xec   : > { %1737 = vpow2.f32 %v1051_v48  ;;  %1076 = vadd.xlane.f32.xlu1 %v1075_v8  ;;  %v423_v48 = vmul.f32 1.442695, %v402_v22  ;;  %v2479_v22 = vpop.xlane.xlu0 %1004 }
  0xed   : > { %1739 = vpow2.f32 %v1047_v19  ;;  %v1732_v40 = vpop.eup %1731  ;;  %v425_v47 = vmul.f32 1.442695, %v403_v57  ;;  %3233 = vst [vmem:[#allocation51_spill] sm:$0xff] %v2479_v22 }
  0xee   : > { %1741 = vpow2.f32 %v415_v54  ;;  %v1081_v43 = vsel %vm348_vm0, %v1732_v40, 0.0  ;;  %v429_v54 = vmul.f32 1.442695, %v405_v51 }
  0xef   : > { %1743 = vpow2.f32 %v417_v3 }
  0xf0   : > { %1079 = vadd.xlane.f32.xlu1 %v1078_v39  ;;  %1745 = vpow2.f32 %v413_v9 }
  0xf1   : > { %v1734_v38 = vpop.eup %1733  ;;  %1747 = vpow2.f32 %v419_v10 }
  0xf2   : > { %v1736_v58 = vpop.eup %1735  ;;  %v1090_v19 = vsel %vm348_vm0, %v1734_v38, 0.0  ;;  %1749 = vpow2.f32 %v427_v11 }
  0xf3   : > { %1091 = vadd.xlane.f32.xlu0 %v1090_v19  ;;  %v1084_v21 = vsel %vm348_vm0, %v1736_v58, 0.0  ;;  %1751 = vpow2.f32 %v421_v16 }
  0xf4   : > { %1082 = vadd.xlane.f32.xlu1 %v1081_v43  ;;  %1753 = vpow2.f32 %v429_v54  ;;  %v544_v54 = vand.u32 65535, %v2206_v50  ;;  %v574_v50 = vand.u32 65535, %v2214_v56 }
  0xf5   : > { %1755 = vpow2.f32 %v423_v48 }
  0xf6   : > { %v1738_v23 = vpop.eup %1737  ;;  %1757 = vpow2.f32 %v431_v1 }
  0xf7   : > { %v1740_v2 = vpop.eup %1739  ;;  %v1093_v33 = vsel %vm348_vm0, %v1738_v23, 0.0  ;;  %1759 = vpow2.f32 %v425_v47  ;;  %v2477_v23 = vpop.xlane.xlu1 %1001 }
  0xf8   : > { %v1742_v60 = vpop.eup %1741  ;;  %1094 = vadd.xlane.f32.xlu0 %v1093_v33  ;;  %1085 = vadd.xlane.f32.xlu1 %v1084_v21  ;;  %v1087_v20 = vsel %vm348_vm0, %v1740_v2, 0.0  ;;  %3232 = vst [vmem:[#allocation50_spill] sm:$0xff] %v2477_v23  ;;  %v1026_v16 = vsub.f32 %v2170_v27, %v2477_v23  ;;  %v2483_v2 = vpop.xlane.xlu0 %1007 }
  0xf9   : > { %v448_v36 = vsel %vm348_vm0, %v1742_v60, 0.0  ;;  %v1744_v8 = vpop.eup %1743  ;;  %3234 = vst [vmem:[#allocation52_spill] sm:$0xff] %v2483_v2  ;;  %v546_v60 = vcvt.s32.f32 %v544_v54 }
  0xfa   : > { %v1746_v32 = vpop.eup %1745  ;;  %v451_v3 = vsel %vm348_vm0, %v1744_v8, 0.0  ;;  %v1053_v21 = vmul.f32 1.442695, %v1026_v16 }
  0xfb   : > { %v1748_v13 = vpop.eup %1747  ;;  %v445_v39 = vsel %vm348_vm0, %v1746_v32, 0.0 }
  0xfc   : > { %449 = vadd.xlane.f32.xlu0 %v448_v36  ;;  %1088 = vadd.xlane.f32.xlu1 %v1087_v20  ;;  %v1750_v24 = vpop.eup %1749  ;;  %v454_v28 = vsel %vm348_vm0, %v1748_v13, 0.0  ;;  %1761 = vpow2.f32 %v1053_v21  ;;  %v2485_v12 = vpop.xlane.xlu0 %1010  ;;  %v559_v20 = vand.u32 65535, %v2233_v6  ;;  %v589_v13 = vand.u32 65535, %v2236_v7  ;;  %v3239_v21 = vld [vmem:[#allocation28_spill] sm:$0xff] }
  0xfd   : > { %v1752_v40 = vpop.eup %1751  ;;  %v466_v9 = vsel %vm348_vm0, %v1750_v24, 0.0  ;;  %3235 = vst [vmem:[#allocation53_spill] sm:$0xff] %v2485_v12  ;;  %v1027_v7 = vsub.f32 %v2175_v30, %v2479_v22 }
  0xfe   : > { %v1754_v44 = vpop.eup %1753  ;;  %v457_v38 = vsel %vm348_vm0, %v1752_v40, 0.0  ;;  %v561_v32 = vcvt.s32.f32 %v559_v20  ;;  %v604_v40 = vand.u32 65535, %v2254_v29 }
  0xff   : > { %v1756_v10 = vpop.eup %1755  ;;  %v469_v45 = vsel %vm348_vm0, %v1754_v44, 0.0 }
 0x100   : > { %452 = vadd.xlane.f32.xlu0 %v451_v3  ;;  %446 = vadd.xlane.f32.xlu1 %v445_v39  ;;  %v1758_v43 = vpop.eup %1757  ;;  %v460_v58 = vsel %vm348_vm0, %v1756_v10, 0.0  ;;  %v576_v3 = vcvt.s32.f32 %v574_v50  ;;  %v634_v39 = vand.u32 65535, %v2277_v61  ;;  %v606_v29 = vcvt.s32.f32 %v604_v40 }
 0x101   : > { %v1760_v11 = vpop.eup %1759  ;;  %v472_v51 = vsel %vm348_vm0, %v1758_v43, 0.0 }
 0x102   : > { %v463_v19 = vsel %vm348_vm0, %v1760_v11, 0.0  ;;  %v1055_v11 = vmul.f32 1.442695, %v1027_v7  ;;  %v3245_v7 = vld [vmem:[#allocation31_spill] sm:$0xff] }
 0x104   : > { %455 = vadd.xlane.f32.xlu0 %v454_v28  ;;  %467 = vadd.xlane.f32.xlu1 %v466_v9  ;;  %v591_v28 = vcvt.s32.f32 %v589_v13  ;;  %v664_v9 = vand.u32 65535, %v2301_v35  ;;  %v3237_v35 = vld [vmem:[#allocation25_spill] sm:$0xff]  ;;  %1763 = vpow2.f32 %v1055_v11  ;;  %v3248_v11 = vld [vmem:[#allocation36_spill] sm:$0xff] }
 0x105   : > { %v619_v43 = vand.u32 65535, %v3237_v35 }
 0x106   : > { %v1762_v48 = vpop.eup %1761 }
 0x107   : > { %v1096_v36 = vsel %vm348_vm0, %v1762_v48, 0.0  ;;  %v621_v48 = vcvt.s32.f32 %v619_v43 }
 0x108   : > { %458 = vadd.xlane.f32.xlu0 %v457_v38  ;;  %470 = vadd.xlane.f32.xlu1 %v469_v45  ;;  %v666_v45 = vcvt.s32.f32 %v664_v9 }
 0x10c   : > { %461 = vadd.xlane.f32.xlu0 %v460_v58  ;;  %473 = vadd.xlane.f32.xlu1 %v472_v51  ;;  %v694_v58 = vand.u32 65535, %v2325_v14 }
 0x10e   : > { %v696_v14 = vcvt.s32.f32 %v694_v58 }
 0x110   : > { %464 = vadd.xlane.f32.xlu0 %v463_v19 }
 0x147   : > { %v2488_v33 = vpop.xlane.xlu0 %548 }
 0x148   : > { %vm550_vm2 = vcmp.eq.f32.partialorder %v2220_v59, %v2488_v33 }
 0x149   : > { %v551_v57 = vsel %vm550_vm2, %v546_v60, inf }
 0x14a   : > { %552 = vmin.xlane.f32.xlu0 %v551_v57  ;;  %v3240_v57 = vld [vmem:[#allocation27_spill] sm:$0xff] }
 0x14b   : > { %v2493_v1 = vpop.xlane.xlu0 %578  ;;  %v2496_v8 = vpop.xlane.xlu1 %563  ;;  %v649_v20 = vand.u32 65535, %v3240_v57 }
 0x14c   : > { %vm565_vm3 = vcmp.eq.f32.partialorder %v2249_v25, %v2496_v8  ;;  %vm580_vm4 = vcmp.eq.f32.partialorder %v2230_v5, %v2493_v1  ;;  %v636_v5 = vcvt.s32.f32 %v634_v39 }
 0x14d   : > { %v566_v47 = vsel %vm565_vm3, %v561_v32, inf  ;;  %v581_v24 = vsel %vm580_vm4, %v576_v3, inf  ;;  %v3243_v3 = vld [vmem:[#allocation38_spill] sm:$0xff]  ;;  %v651_v40 = vcvt.s32.f32 %v649_v20  ;;  %vm1255_vm3 = vcmask 7168  }
 0x14e   : > { %1097 = vadd.xlane.f32.xlu0 %v1096_v36  ;;  %567 = vmin.xlane.f32.xlu1 %v566_v47  ;;  %v3241_v36 = vld [vmem:[#allocation40_spill] sm:$0xff] }
 0x14f   : > { %v2503_v59 = vpop.xlane.xlu1 %593  ;;  %v2505_v6 = vpop.xlane.xlu0 %608  ;;  %v724_v32 = vand.u32 65535, %v3241_v36 }
 0x150   : > { %vm595_vm5 = vcmp.eq.f32.partialorder %v2264_v34, %v2503_v59  ;;  %v3236_v34 = vld [vmem:[#allocation26_spill] sm:$0xff] }
 0x151   : > { %v596_v61 = vsel %vm595_vm5, %v591_v28, inf  ;;  %vm610_vm7 = vcmp.eq.f32.partialorder %v3236_v34, %v2505_v6  ;;  %v726_v9 = vcvt.s32.f32 %v724_v32  ;;  %v3246_v34 = vld [vmem:[#allocation30_spill] sm:$0xff] }
 0x152   : > { %582 = vmin.xlane.f32.xlu1 %v581_v24  ;;  %v611_v19 = vsel %vm610_vm7, %v606_v29, inf  ;;  %v3244_v24 = vld [vmem:[#allocation32_spill] sm:$0xff]  ;;  %v3247_v29 = vld [vmem:[#allocation10_spill] sm:$0xff] }
 0x153   : > { %v2511_v56 = vpop.xlane.xlu1 %623  ;;  %v2513_v25 = vpop.xlane.xlu0 %638 }
 0x154   : > { %vm640_vm6 = vcmp.eq.f32.partialorder %v2296_v46, %v2513_v25  ;;  %v3238_v46 = vld [vmem:[#allocation22_spill] sm:$0xff]  ;;  %vm625_vm9 = vcmp.eq.f32.partialorder %v3239_v21, %v2511_v56 }
 0x155   : > { %v641_v44 = vsel %vm640_vm6, %v636_v5, inf  ;;  %v1028_v51 = vsub.f32 %v3238_v46, %v2483_v2  ;;  %v626_v13 = vsel %vm625_vm9, %v621_v48, inf }
 0x156   : > { %597 = vmin.xlane.f32.xlu1 %v596_v61  ;;  %642 = vmin.xlane.f32.xlu0 %v641_v44  ;;  %v679_v61 = vand.u32 65535, %v3245_v7  ;;  %v754_v44 = vand.u32 65535, %v2373_v0 }
 0x157   : > { %v2523_v38 = vpop.xlane.xlu1 %653  ;;  %v2525_v10 = vpop.xlane.xlu0 %668  ;;  %v1057_v50 = vmul.f32 1.442695, %v1028_v51  ;;  %v3249_v51 = vld [vmem:[#allocation29_spill] sm:$0xff] }
 0x158   : > { %vm670_vm8 = vcmp.eq.f32.partialorder %v2320_v41, %v2525_v10  ;;  %v3242_v41 = vld [vmem:[#allocation23_spill] sm:$0xff]  ;;  %vm655_vm11 = vcmp.eq.f32.partialorder %v3244_v24, %v2523_v38  ;;  %v681_v0 = vcvt.s32.f32 %v679_v61  ;;  %v756_v48 = vcvt.s32.f32 %v754_v44  ;;  %v3257_v61 = vld [vmem:[#allocation12_spill] sm:$0xff] }
 0x159   : > { %v671_v16 = vsel %vm670_vm8, %v666_v45, inf  ;;  %v1029_v47 = vsub.f32 %v3242_v41, %v2485_v12  ;;  %v407_v45 = vsub.f32 %v3247_v29, %v3246_v34  ;;  %1765 = vpow2.f32 %v1057_v50  ;;  %v1764_v50 = vpop.eup %1763 }
 0x15a   : > { %612 = vmin.xlane.f32.xlu1 %v611_v19  ;;  %672 = vmin.xlane.f32.xlu0 %v671_v16  ;;  %v656_v43 = vsel %vm655_vm11, %v651_v40, inf  ;;  %v3250_v19 = vld [vmem:[#allocation9_spill] sm:$0xff] }
 0x15b   : > { %v2535_v54 = vpop.xlane.xlu1 %683  ;;  %v2537_v60 = vpop.xlane.xlu0 %698  ;;  %v1059_v35 = vmul.f32 1.442695, %v1029_v47  ;;  %v408_v16 = vsub.f32 %v3250_v19, %v3249_v51  ;;  %v433_v20 = vmul.f32 1.442695, %v407_v45  ;;  %v3252_v47 = vld [vmem:[#allocation37_spill] sm:$0xff]  ;;  %v1099_v45 = vsel %vm348_vm0, %v1764_v50, 0.0 }
 0x15c   : > { %vm700_vm10 = vcmp.eq.f32.partialorder %v3243_v3, %v2537_v60  ;;  %vm685_vm13 = vcmp.eq.f32.partialorder %v3248_v11, %v2535_v54  ;;  %v3253_v3 = vld [vmem:[#allocation13_spill] sm:$0xff]  ;;  %v769_v51 = vand.u32 65535, %v2376_v31  ;;  %v3261_v31 = vld [vmem:[#allocation14_spill] sm:$0xff] }
 0x15d   : > { %v701_v39 = vsel %vm700_vm10, %v696_v14, inf  ;;  %v3251_v14 = vld [vmem:[#allocation35_spill] sm:$0xff]  ;;  %1767 = vpow2.f32 %v1059_v35  ;;  %v686_v36 = vsel %vm685_vm13, %v681_v0, inf  ;;  %v3258_v19 = vld [vmem:[#allocation33_spill] sm:$0xff] }
 0x15e   : > { %627 = vmin.xlane.f32.xlu1 %v626_v13  ;;  %702 = vmin.xlane.f32.xlu0 %v701_v39  ;;  %v709_v57 = vand.u32 65535, %v3251_v14  ;;  %v412_v13 = vsub.f32 %v3253_v3, %v3252_v47  ;;  %v435_v39 = vmul.f32 1.442695, %v408_v16  ;;  %1769 = vpow2.f32 %v433_v20  ;;  %v3259_v16 = vld [vmem:[#allocation11_spill] sm:$0xff] }
 0x15f   : > { %v2547_v28 = vpop.xlane.xlu1 %713  ;;  %v2549_v5 = vpop.xlane.xlu0 %728  ;;  %v410_v0 = vsub.f32 %v3259_v16, %v3258_v19 }
 0x160   : > { %vm730_vm12 = vcmp.eq.f32.partialorder %v2368_v52, %v2549_v5  ;;  %vm715_vm15 = vcmp.eq.f32.partialorder %v2360_v42, %v2547_v28  ;;  %v711_v40 = vcvt.s32.f32 %v709_v57  ;;  %1771 = vpow2.f32 %v435_v39 }
 0x161   : > { %v731_v58 = vsel %vm730_vm12, %v726_v9, inf  ;;  %v3255_v9 = vld [vmem:[#allocation41_spill] sm:$0xff] }
 0x162   : > { %657 = vmin.xlane.f32.xlu1 %v656_v43  ;;  %732 = vmin.xlane.f32.xlu0 %v731_v58  ;;  %v739_v7 = vand.u32 65535, %v3255_v9  ;;  %v716_v29 = vsel %vm715_vm15, %v711_v40, inf  ;;  %v443_v43 = vmul.f32 1.442695, %v412_v13 }
 0x163   : > { %v2561_v21 = vpop.xlane.xlu0 %758  ;;  %v2566_v52 = vpop.xlane.xlu1 %743 }
 0x164   : > { %vm760_vm14 = vcmp.eq.f32.partialorder %v2388_v37, %v2561_v21  ;;  %v3256_v37 = vld [vmem:[#allocation34_spill] sm:$0xff]  ;;  %v1766_v35 = vpop.eup %1765  ;;  %vm745_vm1 = vcmp.eq.f32.partialorder %v2385_v49, %v2566_v52  ;;  %v741_v11 = vcvt.s32.f32 %v739_v7  ;;  %v771_v49 = vcvt.s32.f32 %v769_v51 }
 0x165   : > { %v761_v32 = vsel %vm760_vm14, %v756_v48, inf  ;;  %v409_v44 = vsub.f32 %v3257_v61, %v3256_v37  ;;  %v1102_v57 = vsel %vm348_vm0, %v1766_v35, 0.0 }
 0x166   : > { %687 = vmin.xlane.f32.xlu1 %v686_v36  ;;  %762 = vmin.xlane.f32.xlu0 %v761_v32  ;;  %v746_v14 = vsel %vm745_vm1, %v741_v11, inf  ;;  %v439_v36 = vmul.f32 1.442695, %v410_v0  ;;  %v3260_v32 = vld [vmem:[#allocation39_spill] sm:$0xff] }
 0x167   : > { %v2572_v24 = vpop.xlane.xlu0 %1013  ;;  %v2582_v42 = vpop.xlane.xlu1 %773  ;;  %v437_v48 = vmul.f32 1.442695, %v409_v44  ;;  %v411_v50 = vsub.f32 %v3261_v31, %v3260_v32 }
 0x168   : > { %3254 = vst [vmem:[#allocation26_spill] sm:$0xff] %v2572_v24  ;;  %v1030_v34 = vsub.f32 %v2391_v15, %v2572_v24  ;;  %v1768_v20 = vpop.eup %1767  ;;  %vm775_vm2 = vcmp.eq.f32.partialorder %v2403_v53, %v2582_v42 }
 0x169   : > { %v776_v47 = vsel %vm775_vm2, %v771_v49, inf  ;;  %v1105_v3 = vsel %vm348_vm0, %v1768_v20, 0.0  ;;  %v1770_v13 = vpop.eup %1769  ;;  %v441_v39 = vmul.f32 1.442695, %v411_v50 }
 0x16a   : > { %v1061_v58 = vmul.f32 1.442695, %v1030_v34  ;;  %717 = vmin.xlane.f32.xlu1 %v716_v29  ;;  %1100 = vadd.xlane.f32.xlu0 %v1099_v45  ;;  %v1772_v40 = vpop.eup %1771  ;;  %v475_v9 = vsel %vm348_vm0, %v1770_v13, 0.0 }
 0x16b   : > { %v478_v61 = vsel %vm348_vm0, %v1772_v40, 0.0 }
 0x16c   : > { %1773 = vpow2.f32 %v1061_v58 }
 0x16d   : > { %1775 = vpow2.f32 %v443_v43 }
 0x16e   : > { %747 = vmin.xlane.f32.xlu1 %v746_v14  ;;  %1103 = vadd.xlane.f32.xlu0 %v1102_v57  ;;  %1777 = vpow2.f32 %v437_v48 }
 0x16f   : > { %1779 = vpow2.f32 %v439_v36 }
 0x170   : > { %1781 = vpow2.f32 %v441_v39  ;;  %v2600_v11 = vpop.xlane.xlu1 %1067 }
 0x171   : > { %v2602_v51 = vpop.xlane.xlu0 %1064 }
 0x172   : > { %777 = vmin.xlane.f32.xlu1 %v776_v47  ;;  %1106 = vadd.xlane.f32.xlu0 %v1105_v3 }
 0x174   : > { %v2604_v19 = vpop.xlane.xlu1 %1073 }
 0x175   : > { %v2606_v16 = vpop.xlane.xlu0 %1070 }
 0x176   : > { %v1774_v7 = vpop.eup %1773  ;;  %476 = vadd.xlane.f32.xlu1 %v475_v9 }
 0x177   : > { %v1108_v53 = vsel %vm348_vm0, %v1774_v7, 0.0  ;;  %v1776_v37 = vpop.eup %1775  ;;  %v555_v7 = vcvt.f32.s32 %v2488_v33 }
 0x178   : > { %1109 = vadd.xlane.f32.xlu0 %v1108_v53  ;;  %v1778_v44 = vpop.eup %1777  ;;  %v490_v34 = vsel %vm348_vm0, %v1776_v37, 0.0 }
 0x179   : > { %v481_v29 = vsel %vm348_vm0, %v1778_v44, 0.0  ;;  %v1780_v45 = vpop.eup %1779  ;;  %v2608_v0 = vpop.xlane.xlu1 %1076 }
 0x17a   : > { %479 = vadd.xlane.f32.xlu1 %v478_v61  ;;  %v484_v35 = vsel %vm348_vm0, %v1780_v45, 0.0  ;;  %v1782_v43 = vpop.eup %1781  ;;  %v556_v61 = vshll.u32 %v555_v7, 16  ;;  %v2639_v45 = vld [vmem:[%s3136_s3] ss:$0 sm:$0xff] }
 0x17b   : > { %v487_v58 = vsel %vm348_vm0, %v1782_v43, 0.0  ;;  %v3262_v43 = vld [vmem:[#allocation24_spill] sm:$0xff] }
 0x17c   : > { %491 = vadd.xlane.f32.xlu0 %v490_v34 }
 0x17d   : > { %v2612_v14 = vpop.xlane.xlu1 %1079 }
 0x17e   : > { %482 = vadd.xlane.f32.xlu1 %v481_v29  ;;  %v570_v29 = vcvt.f32.s32 %v2496_v8 }
 0x180   : > { %v2610_v48 = vpop.xlane.xlu0 %1091 }
 0x181   : > { %v2616_v20 = vpop.xlane.xlu1 %1082 }
 0x182   : > { %485 = vadd.xlane.f32.xlu1 %v484_v35 }
 0x185   : > { %v2614_v57 = vpop.xlane.xlu0 %1094  ;;  %v2618_v36 = vpop.xlane.xlu1 %1085 }
 0x186   : > { %488 = vadd.xlane.f32.xlu1 %v487_v58 }
 0x189   : > { %v450_v49 = vpop.xlane.xlu0 %449  ;;  %v2620_v31 = vpop.xlane.xlu1 %1088 }
 0x18d   : > { %v453_v32 = vpop.xlane.xlu0 %452  ;;  %v447_v47 = vpop.xlane.xlu1 %446 }
 0x18e   : > { %1783 = vrcp.f32 %v447_v47  ;;  %v585_v47 = vcvt.f32.s32 %v2493_v1 }
 0x18f   : > { %1785 = vrcp.f32 %v450_v49 }
 0x190   : > { %1787 = vrcp.f32 %v453_v32  ;;  %v571_v32 = vshll.u32 %v570_v29, 16  ;;  %v586_v1 = vshll.u32 %v585_v47, 16 }
 0x191   : > { %v456_v50 = vpop.xlane.xlu0 %455  ;;  %v2622_v13 = vpop.xlane.xlu1 %467 }
 0x192   : > { %1789 = vrcp.f32 %v456_v50 }
 0x195   : > { %v459_v3 = vpop.xlane.xlu0 %458  ;;  %v471_v40 = vpop.xlane.xlu1 %470 }
 0x198   : > { %v2626_v37 = vpop.eup %1783 }
 0x199   : > { %v462_v39 = vpop.xlane.xlu0 %461  ;;  %v2628_v34 = vpop.xlane.xlu1 %473  ;;  %vm1340_vm4 = vcmp.gt.f32.partialorder %v2626_v37, 0.95 }
 0x19a   : > { %v2648_v49 = vpop.eup %1785 }
 0x19b   : > { %vm1341_vm6 = vcmp.gt.f32.partialorder %v2648_v49, 0.95  ;;  %v2657_v29 = vpop.eup %1787 }
 0x19c   : > { %vm1342_vm8 = vcmp.gt.f32.partialorder %v2657_v29, 0.95 }
 0x19d   : > { %v465_v9 = vpop.xlane.xlu0 %464 }
 0x19e   : > { %1791 = vrcp.f32 %v465_v9  ;;  %v600_v9 = vcvt.f32.s32 %v2503_v59 }
 0x19f   : > { %1793 = vrcp.f32 %v459_v3  ;;  %v615_v3 = vcvt.f32.s32 %v2505_v6 }
 0x1a0   : > { %1795 = vrcp.f32 %v471_v40 }
 0x1a1   : > { %1797 = vrcp.f32 %v462_v39 }
 0x1a2   : > { %1799 = vrcp.f32 %v2622_v13 }
 0x1a3   : > { %1801 = vrcp.f32 %v2628_v34 }
 0x1d7   : > { %v553_v53 = vpop.xlane.xlu0 %552 }
 0x1d8   : > { %v554_v44 = vcvt.f32.s32 %v553_v53 }
 0x1da   : > { %v557_v33 = vadd.s32 %v556_v61, %v554_v44  ;;  %v645_v61 = vcvt.f32.s32 %v2513_v25  ;;  %v601_v25 = vshll.u32 %v600_v9, 16 }
 0x1db   : > { %v568_v58 = vpop.xlane.xlu1 %567  ;;  %v2655_v44 = vpop.xlane.xlu0 %1097 }
 0x1dc   : > { %v1356_v35 = vsel %vm1340_vm4, %v557_v33, 4294967295  ;;  %vm783_vm5 = vcmp.eq.s32.totalorder %v3262_v43, %v557_v33  ;;  %v569_v7 = vcvt.f32.s32 %v568_v58  ;;  %v646_v47 = vshll.u32 %v645_v61, 16 }
 0x1dd   : > { %1372 = vst.msk [vmem:[%s2633_s21] sm:$0xff] %vm1255_vm3, %v1356_v35  ;;  %v806_v8 = vsel %vm783_vm5, %v2639_v45, 0.0  ;;  %v630_v61 = vcvt.f32.s32 %v2511_v56 }
 0x1de   : > { %v822_v50 = vsel %vm348_vm0, %v806_v8, 0.0  ;;  %v572_v53 = vadd.s32 %v571_v32, %v569_v7  ;;  %v2667_v32 = vpop.eup %1789  ;;  %v675_v7 = vcvt.f32.s32 %v2525_v10 }
 0x1df   : > { %823 = vadd.xlane.f32.xlu0 %v822_v50  ;;  %v583_v35 = vpop.xlane.xlu1 %582  ;;  %v2674_v9 = vpop.eup %1791  ;;  %vm1343_vm10 = vcmp.gt.f32.partialorder %v2667_v32, 0.95 }
 0x1e0   : > { %v1357_v58 = vsel %vm1341_vm6, %v572_v53, 4294967295  ;;  %v584_v24 = vcvt.f32.s32 %v583_v35  ;;  %vm784_vm7 = vcmp.eq.s32.totalorder %v3262_v43, %v572_v53  ;;  %v3263_v35 = vld [vmem:[#allocation16_spill] sm:$0xff]  ;;  %vm1346_vm11 = vcmp.gt.f32.partialorder %v2674_v9, 0.95 }
 0x1e1   : > { %1373 = vst.msk [vmem:[%s2633_s21 + $0x8] sm:$0xff] %vm1255_vm3, %v1357_v58  ;;  %v807_v59 = vsel %vm784_vm7, %v2639_v45, 0.0  ;;  %v1159_v58 = vsel %vm783_vm5, %v3263_v35, 0.0 }
 0x1e2   : > { %v587_v40 = vadd.s32 %v586_v1, %v584_v24  ;;  %v825_v8 = vsel %vm348_vm0, %v807_v59, 0.0  ;;  %v616_v59 = vshll.u32 %v615_v3, 16  ;;  %v1175_v35 = vsel %vm348_vm0, %v1159_v58, 0.0 }
 0x1e3   : > { %v598_v6 = vpop.xlane.xlu1 %597  ;;  %826 = vadd.xlane.f32.xlu1 %v825_v8  ;;  %v643_v50 = vpop.xlane.xlu0 %642  ;;  %v676_v3 = vshll.u32 %v675_v7, 16 }
 0x1e4   : > { %v1358_v24 = vsel %vm1342_vm8, %v587_v40, 4294967295  ;;  %v599_v39 = vcvt.f32.s32 %v598_v6  ;;  %v644_v1 = vcvt.f32.s32 %v643_v50  ;;  %vm785_vm9 = vcmp.eq.s32.totalorder %v3262_v43, %v587_v40  ;;  %v2688_v50 = vpop.eup %1793 }
 0x1e5   : > { %1374 = vst.msk [vmem:[%s2633_s21 + $0x10] sm:$0xff] %vm1255_vm3, %v1358_v24  ;;  %v808_v10 = vsel %vm785_vm9, %v2639_v45, 0.0  ;;  %v2695_v58 = vpop.eup %1795  ;;  %vm1344_vm13 = vcmp.gt.f32.partialorder %v2688_v50, 0.95 }
 0x1e6   : > { %v602_v33 = vadd.s32 %v601_v25, %v599_v39  ;;  %v2684_v8 = vadd.s32 %v646_v47, %v644_v1  ;;  %v828_v6 = vsel %vm348_vm0, %v808_v10, 0.0  ;;  %v3264_v25 = vld [vmem:[#allocation15_spill] sm:$0xff]  ;;  %v660_v10 = vcvt.f32.s32 %v2523_v38 }
 0x1e7   : > { %v613_v56 = vpop.xlane.xlu1 %612  ;;  %1176 = vadd.xlane.f32.xlu1 %v1175_v35  ;;  %829 = vadd.xlane.f32.xlu0 %v828_v6  ;;  %v673_v13 = vpop.xlane.xlu0 %672  ;;  %v1160_v47 = vsel %vm784_vm7, %v3264_v25, 0.0  ;;  %vm1348_vm14 = vcmp.gt.f32.partialorder %v2695_v58, 0.95  ;;  %v631_v25 = vshll.u32 %v630_v61, 16 }
 0x1e8   : > { %v1359_v24 = vsel %vm1343_vm10, %v602_v33, 4294967295  ;;  %v1362_v39 = vsel %vm1346_vm11, %v2684_v8, 4294967295  ;;  %v614_v1 = vcvt.f32.s32 %v613_v56  ;;  %v674_v7 = vcvt.f32.s32 %v673_v13 }
 0x1e9   : > { %1375 = vst.msk [vmem:[%s2633_s21 + $0x18] sm:$0xff] %vm1255_vm3, %v1359_v24  ;;  %1378 = vst.msk [vmem:[%s2633_s21 + $0x30] sm:$0xff] %vm1255_vm3, %v1362_v39  ;;  %vm786_vm12 = vcmp.eq.s32.totalorder %v3262_v43, %v602_v33  ;;  %v1178_v56 = vsel %vm348_vm0, %v1160_v47, 0.0  ;;  %vm789_vm4 = vcmp.eq.s32.totalorder %v3262_v43, %v2684_v8 }
 0x1ea   : > { %v617_v35 = vadd.s32 %v616_v59, %v614_v1  ;;  %v2705_v53 = vadd.s32 %v676_v3, %v674_v7  ;;  %v809_v6 = vsel %vm786_vm12, %v2639_v45, 0.0  ;;  %v1161_v59 = vsel %vm785_vm9, %v2134_v63, 0.0  ;;  %v2719_v3 = vpop.eup %1797 }
 0x1eb   : > { %v628_v38 = vpop.xlane.xlu1 %627  ;;  %v831_v34 = vsel %vm348_vm0, %v809_v6, 0.0  ;;  %1179 = vadd.xlane.f32.xlu0 %v1178_v56  ;;  %v2714_v13 = vpop.xlane.xlu0 %702  ;;  %v1181_v40 = vsel %vm348_vm0, %v1161_v59, 0.0  ;;  %v661_v7 = vshll.u32 %v660_v10, 16  ;;  %vm1345_vm1 = vcmp.gt.f32.partialorder %v2719_v3, 0.95 }
 0x1ec   : > { %v1360_v24 = vsel %vm1344_vm13, %v617_v35, 4294967295  ;;  %v1364_v47 = vsel %vm1348_vm14, %v2705_v53, 4294967295  ;;  %v629_v39 = vcvt.f32.s32 %v628_v38  ;;  %832 = vadd.xlane.f32.xlu1 %v831_v34  ;;  %vm787_vm15 = vcmp.eq.s32.totalorder %v3262_v43, %v617_v35  ;;  %v2731_v61 = vpop.eup %1799  ;;  %v3265_v34 = vld [vmem:[#allocation17_spill] sm:$0xff] }
 0x1ed   : > { %1376 = vst.msk [vmem:[%s2633_s21 + $0x20] sm:$0xff] %vm1255_vm3, %v1360_v24  ;;  %1380 = vst.msk [vmem:[%s2633_s21 + $0x40] sm:$0xff] %vm1255_vm3, %v1364_v47  ;;  %v810_v63 = vsel %vm787_vm15, %v2639_v45, 0.0  ;;  %v690_v24 = vcvt.f32.s32 %v2535_v54  ;;  %vm1347_vm5 = vcmp.gt.f32.partialorder %v2731_v61, 0.95  ;;  %vm791_vm8 = vcmp.eq.s32.totalorder %v3262_v43, %v2705_v53 }
 0x1ee   : > { %v632_v1 = vadd.s32 %v631_v25, %v629_v39  ;;  %v834_v56 = vsel %vm348_vm0, %v810_v63, 0.0  ;;  %v1162_v25 = vsel %vm786_vm12, %v3265_v34, 0.0  ;;  %v2751_v63 = vpop.eup %1801 }
 0x1ef   : > { %v658_v6 = vpop.xlane.xlu1 %657  ;;  %1182 = vadd.xlane.f32.xlu0 %v1181_v40  ;;  %v2735_v38 = vpop.xlane.xlu0 %732  ;;  %v1184_v54 = vsel %vm348_vm0, %v1162_v25, 0.0  ;;  %vm1349_vm7 = vcmp.gt.f32.partialorder %v2751_v63, 0.95 }
 0x1f0   : > { %v1361_v47 = vsel %vm1345_vm1, %v632_v1, 4294967295  ;;  %v659_v39 = vcvt.f32.s32 %v658_v6  ;;  %835 = vadd.xlane.f32.xlu1 %v834_v56  ;;  %vm788_vm2 = vcmp.eq.s32.totalorder %v3262_v43, %v632_v1  ;;  %v3266_v56 = vld [vmem:[#allocation19_spill] sm:$0xff] }
 0x1f1   : > { %1377 = vst.msk [vmem:[%s2633_s21 + $0x28] sm:$0xff] %vm1255_vm3, %v1361_v47  ;;  %v811_v10 = vsel %vm788_vm2, %v2639_v45, 0.0  ;;  %v1163_v34 = vsel %vm787_vm15, %v3266_v56, 0.0  ;;  %v691_v47 = vshll.u32 %v690_v24, 16 }
 0x1f2   : > { %v662_v59 = vadd.s32 %v661_v7, %v659_v39  ;;  %v837_v33 = vsel %vm348_vm0, %v811_v10, 0.0  ;;  %v812_v7 = vsel %vm789_vm4, %v2639_v45, 0.0  ;;  %v1187_v39 = vsel %vm348_vm0, %v1163_v34, 0.0 }
 0x1f3   : > { %v688_v40 = vpop.xlane.xlu1 %687  ;;  %1185 = vadd.xlane.f32.xlu0 %v1184_v54  ;;  %v2754_v6 = vpop.xlane.xlu0 %762  ;;  %v840_v24 = vsel %vm348_vm0, %v812_v7, 0.0  ;;  %v720_v34 = vcvt.f32.s32 %v2547_v28 }
 0x1f4   : > { %v1363_v12 = vsel %vm1347_vm5, %v662_v59, 4294967295  ;;  %v689_v2 = vcvt.f32.s32 %v688_v40  ;;  %838 = vadd.xlane.f32.xlu1 %v837_v33  ;;  %vm790_vm6 = vcmp.eq.s32.totalorder %v3262_v43, %v662_v59  ;;  %v3267_v33 = vld [vmem:[#allocation18_spill] sm:$0xff] }
 0x1f5   : > { %1379 = vst.msk [vmem:[%s2633_s21 + $0x38] sm:$0xff] %vm1255_vm3, %v1363_v12  ;;  %v1164_v54 = vsel %vm788_vm2, %v3267_v33, 0.0  ;;  %v705_v12 = vcvt.f32.s32 %v2537_v60  ;;  %v704_v33 = vcvt.f32.s32 %v2714_v13  ;;  %v814_v60 = vsel %vm791_vm8, %v2639_v45, 0.0  ;;  %v3269_v13 = vld [vmem:[#allocation20_spill] sm:$0xff] }
 0x1f6   : > { %v692_v25 = vadd.s32 %v691_v47, %v689_v2  ;;  %v813_v2 = vsel %vm790_vm6, %v2639_v45, 0.0  ;;  %v1190_v56 = vsel %vm348_vm0, %v1164_v54, 0.0  ;;  %v846_v8 = vsel %vm348_vm0, %v814_v60, 0.0 }
 0x1f7   : > { %v718_v35 = vpop.xlane.xlu1 %717  ;;  %1188 = vadd.xlane.f32.xlu0 %v1187_v39  ;;  %v2769_v10 = vpop.xlane.xlu0 %1100  ;;  %v843_v1 = vsel %vm348_vm0, %v813_v2, 0.0  ;;  %v3268_v39 = vld [vmem:[#allocation21_spill] sm:$0xff]  ;;  %v706_v54 = vshll.u32 %v705_v12, 16  ;;  %v721_v2 = vshll.u32 %v720_v34, 16  ;;  %v734_v12 = vcvt.f32.s32 %v2735_v38 }
 0x1f8   : > { %v1365_v40 = vsel %vm1349_vm7, %v692_v25, 4294967295  ;;  %841 = vadd.xlane.f32.xlu1 %v840_v24  ;;  %v1165_v24 = vsel %vm789_vm4, %v3268_v39, 0.0  ;;  %v719_v28 = vcvt.f32.s32 %v718_v35  ;;  %vm792_vm9 = vcmp.eq.s32.totalorder %v3262_v43, %v692_v25 }
 0x1f9   : > { %1381 = vst.msk [vmem:[%s2633_s21 + $0x48] sm:$0xff] %vm1255_vm3, %v1365_v40  ;;  %v1193_v40 = vsel %vm348_vm0, %v1165_v24, 0.0  ;;  %v707_v39 = vadd.s32 %v706_v54, %v704_v33  ;;  %v815_v35 = vsel %vm792_vm9, %v2639_v45, 0.0  ;;  %v750_v60 = vcvt.f32.s32 %v2566_v52 }
 0x1fa   : > { %v2809_v34 = vadd.s32 %v721_v2, %v719_v28  ;;  %v849_v59 = vsel %vm348_vm0, %v815_v35, 0.0  ;;  %v1167_v33 = vsel %vm791_vm8, %v2161_v18, 0.0  ;;  %v1168_v38 = vsel %vm792_vm9, %v2159_v17, 0.0 }
 0x1fb   : > { %v748_v47 = vpop.xlane.xlu1 %747  ;;  %1191 = vadd.xlane.f32.xlu0 %v1190_v56  ;;  %v2785_v7 = vpop.xlane.xlu0 %1103  ;;  %v735_v56 = vcvt.f32.s32 %v2549_v5  ;;  %vm793_vm10 = vcmp.eq.s32.totalorder %v3262_v43, %v707_v39  ;;  %v1199_v2 = vsel %vm348_vm0, %v1167_v33, 0.0  ;;  %v751_v53 = vshll.u32 %v750_v60, 16 }
 0x1fc   : > { %844 = vadd.xlane.f32.xlu1 %v843_v1  ;;  %v1166_v1 = vsel %vm790_vm6, %v3269_v13, 0.0  ;;  %v749_v52 = vcvt.f32.s32 %v748_v47  ;;  %vm794_vm11 = vcmp.eq.s32.totalorder %v3262_v43, %v2809_v34  ;;  %v765_v18 = vcvt.f32.s32 %v2561_v21 }
 0x1fd   : > { %v1196_v24 = vsel %vm348_vm0, %v1166_v1, 0.0  ;;  %v1202_v25 = vsel %vm348_vm0, %v1168_v38, 0.0  ;;  %v816_v17 = vsel %vm793_vm10, %v2639_v45, 0.0  ;;  %v817_v47 = vsel %vm794_vm11, %v2639_v45, 0.0 }
 0x1fe   : > { %v852_v13 = vsel %vm348_vm0, %v816_v17, 0.0  ;;  %v766_v1 = vshll.u32 %v765_v18, 16  ;;  %v780_v35 = vcvt.f32.s32 %v2582_v42 }
 0x1ff   : > { %v2799_v22 = vpop.xlane.xlu1 %777  ;;  %1194 = vadd.xlane.f32.xlu0 %v1193_v40  ;;  %v2811_v5 = vpop.xlane.xlu0 %1106  ;;  %v736_v40 = vshll.u32 %v735_v56, 16  ;;  %v764_v56 = vcvt.f32.s32 %v2754_v6  ;;  %v1169_v6 = vsel %vm793_vm10, %v2168_v26, 0.0 }
 0x200   : > { %847 = vadd.xlane.f32.xlu1 %v846_v8  ;;  %v2841_v8 = vadd.s32 %v751_v53, %v749_v52  ;;  %v1205_v33 = vsel %vm348_vm0, %v1169_v6, 0.0  ;;  %v781_v38 = vshll.u32 %v780_v35, 16 }
 0x201   : > { %v2824_v28 = vadd.s32 %v736_v40, %v734_v12  ;;  %v767_v60 = vadd.s32 %v766_v1, %v764_v56 }
 0x202   : > { %vm796_vm13 = vcmp.eq.s32.totalorder %v3262_v43, %v2841_v8 }
 0x203   : > { %v477_v23 = vpop.xlane.xlu1 %476  ;;  %1197 = vadd.xlane.f32.xlu0 %v1196_v24  ;;  %vm795_vm12 = vcmp.eq.s32.totalorder %v3262_v43, %v2824_v28  ;;  %v855_v24 = vsel %vm348_vm0, %v817_v47, 0.0  ;;  %v819_v53 = vsel %vm796_vm13, %v2639_v45, 0.0  ;;  %vm797_vm15 = vcmp.eq.s32.totalorder %v3262_v43, %v767_v60 }
 0x204   : > { %1803 = vrcp.f32 %v477_v23  ;;  %850 = vadd.xlane.f32.xlu1 %v849_v59  ;;  %v818_v40 = vsel %vm795_vm12, %v2639_v45, 0.0  ;;  %v779_v59 = vcvt.f32.s32 %v2799_v22  ;;  %v1171_v17 = vsel %vm795_vm12, %v2175_v30, 0.0 }
 0x205   : > { %v2826_v54 = vpop.xlane.xlu0 %1109  ;;  %v858_v52 = vsel %vm348_vm0, %v818_v40, 0.0  ;;  %v1211_v1 = vsel %vm348_vm0, %v1171_v17, 0.0  ;;  %v1172_v35 = vsel %vm796_vm13, %v3238_v46, 0.0  ;;  %v1173_v46 = vsel %vm797_vm15, %v3242_v41, 0.0 }
 0x206   : > { %v782_v18 = vadd.s32 %v781_v38, %v779_v59  ;;  %v1214_v40 = vsel %vm348_vm0, %v1172_v35, 0.0  ;;  %v1217_v38 = vsel %vm348_vm0, %v1173_v46, 0.0  ;;  %v2935_v41 = vstv %s299_s29  ;;  %s1847_s29 = scalar_lea.vmem %s3065_s14, 128 }
 0x207   : > { %v480_v23 = vpop.xlane.xlu1 %479  ;;  %1200 = vadd.xlane.f32.xlu0 %v1199_v2  ;;  %v1170_v2 = vsel %vm794_vm11, %v2170_v27, 0.0  ;;  %p1848_p11 = scmp.ne.s32.totalorder %s3065_s14, %s1847_s29  ;;  %p1855_p1 = scmp.lt.s32.totalorder %s1853_s17, %s1847_s29 }
 0x208   : > { %1805 = vrcp.f32 %v480_v23  ;;  %1203 = vadd.xlane.f32.xlu1 %v1202_v25  ;;  %v1208_v25 = vsel %vm348_vm0, %v1170_v2, 0.0  ;;  %vm798_vm4 = vcmp.eq.s32.totalorder %v3262_v43, %v782_v18 }
 0x209   : > { %v492_v21 = vpop.xlane.xlu0 %491  ;;  %p1849_p12 = pnand %p1848_p11, %p2022_p5  ;;  %p1856_p2 = por %p1855_p1, %p1854_p0 }
 0x20a   : > { %1807 = vrcp.f32 %v492_v21  ;;  %v820_v21 = vsel %vm797_vm15, %v2639_v45, 0.0 }
 0x20b   : > { %v483_v12 = vpop.xlane.xlu1 %482  ;;  %853 = vadd.xlane.f32.xlu0 %v852_v13  ;;  %p1850_p13 = pneg %p1849_p12 }
 0x20c   : > { %1809 = vrcp.f32 %v483_v12  ;;  %856 = vadd.xlane.f32.xlu1 %v855_v24  ;;  %v821_v24 = vsel %vm798_vm4, %v2639_v45, 0.0  ;;  %v1174_v45 = vsel %vm798_vm4, %v2391_v15, 0.0 }
 0x20d   : > { %v867_v59 = vsel %vm348_vm0, %v821_v24, 0.0  ;;  %p1857_p3 = pnand %p1856_p2, %p1850_p13 }
 0x20e   : > { %v2858_v42 = vpop.eup %1803 }
 0x20f   : > { %vm1350_vm14 = vcmp.gt.f32.partialorder %v2858_v42, 0.95  ;;  %v486_v26 = vpop.xlane.xlu1 %485  ;;  %1206 = vadd.xlane.f32.xlu0 %v1205_v33 }
 0x210   : > { %v1366_v22 = vsel %vm1350_vm14, %v707_v39, 4294967295  ;;  %1811 = vrcp.f32 %v486_v26  ;;  %859 = vadd.xlane.f32.xlu1 %v858_v52  ;;  %v861_v39 = vsel %vm348_vm0, %v819_v53, 0.0  ;;  %v1220_v26 = vsel %vm348_vm0, %v1174_v45, 0.0 }
 0x211   : > { %1382 = vst.msk [vmem:[%s2633_s21 + $0x50] sm:$0xff] %vm1255_vm3, %v1366_v22 }
 0x212   : > { %v2874_v23 = vpop.eup %1805 }
 0x213   : > { %vm1351_vm1 = vcmp.gt.f32.partialorder %v2874_v23, 0.95  ;;  %v489_v27 = vpop.xlane.xlu1 %488  ;;  %1209 = vadd.xlane.f32.xlu0 %v1208_v25 }
 0x214   : > { %v2883_v47 = vpop.eup %1807  ;;  %v1367_v56 = vsel %vm1351_vm1, %v2809_v34, 4294967295  ;;  %1813 = vrcp.f32 %v489_v27  ;;  %862 = vadd.xlane.f32.xlu1 %v861_v39  ;;  %v864_v34 = vsel %vm348_vm0, %v820_v21, 0.0 }
 0x215   : > { %1383 = vst.msk [vmem:[%s2633_s21 + $0x58] sm:$0xff] %vm1255_vm3, %v1367_v56  ;;  %vm1355_vm2 = vcmp.gt.f32.partialorder %v2883_v47, 0.95  ;;  %1815 = vlog2.f32 %v2602_v51 }
 0x216   : > { %v2893_v13 = vpop.eup %1809  ;;  %v1371_v30 = vsel %vm1355_vm2, %v782_v18, 4294967295  ;;  %1817 = vlog2.f32 %v2600_v11  ;;  %v3270_v11 = vld [vmem:[#allocation43_spill] sm:$0xff] }
 0x217   : > { %1387 = vst.msk [vmem:[%s2633_s21 + $0x78] sm:$0xff] %vm1255_vm3, %v1371_v30  ;;  %vm1352_vm5 = vcmp.gt.f32.partialorder %v2893_v13, 0.95  ;;  %1212 = vadd.xlane.f32.xlu0 %v1211_v1  ;;  %1819 = vlog2.f32 %v2606_v16  ;;  %v1943_v30 = vmov 0.0  }
 0x218   : > { %v1368_v12 = vsel %vm1352_vm5, %v2824_v28, 4294967295  ;;  %865 = vadd.xlane.f32.xlu1 %v864_v34  ;;  %1821 = vlog2.f32 %v2604_v19 }
 0x219   : > { %1384 = vst.msk [vmem:[%s2633_s21 + $0x60] sm:$0xff] %vm1255_vm3, %v1368_v12  ;;  %1823 = vlog2.f32 %v2608_v0  ;;  %v3271_v0 = vld [vmem:[#allocation42_spill] sm:$0xff] }
 0x21a   : > { %v2910_v6 = vpop.eup %1811  ;;  %1825 = vlog2.f32 %v2612_v14 }
 0x21b   : > { %vm1353_vm6 = vcmp.gt.f32.partialorder %v2910_v6, 0.95  ;;  %1215 = vadd.xlane.f32.xlu0 %v1214_v40  ;;  %1827 = vlog2.f32 %v2616_v20 }
 0x21c   : > { %v1369_v28 = vsel %vm1353_vm6, %v2841_v8, 4294967295  ;;  %868 = vadd.xlane.f32.xlu1 %v867_v59  ;;  %v3272_v59 = vld [vmem:[#allocation45_spill] sm:$0xff]  ;;  %1829 = vlog2.f32 %v2618_v36 }
 0x21d   : > { %1385 = vst.msk [vmem:[%s2633_s21 + $0x68] sm:$0xff] %vm1255_vm3, %v1369_v28  ;;  %1831 = vlog2.f32 %v2620_v31 }
 0x21e   : > { %v2924_v33 = vpop.eup %1813  ;;  %1833 = vlog2.f32 %v2610_v48 }
 0x21f   : > { %vm1354_vm7 = vcmp.gt.f32.partialorder %v2924_v33, 0.95  ;;  %1218 = vadd.xlane.f32.xlu0 %v1217_v38  ;;  %v1816_v15 = vpop.eup %1815  ;;  %1835 = vlog2.f32 %v2614_v57 }
 0x220   : > { %v1370_v52 = vsel %vm1354_vm7, %v767_v60, 4294967295  ;;  %1221 = vadd.xlane.f32.xlu1 %v1220_v26  ;;  %v1112_v8 = vmul.f32 0.6931472, %v1816_v15  ;;  %v1818_v2 = vpop.eup %1817  ;;  %1837 = vlog2.f32 %v2655_v44 }
 0x221   : > { %1386 = vst.msk [vmem:[%s2633_s21 + $0x70] sm:$0xff] %vm1255_vm3, %v1370_v52  ;;  %v1114_v53 = vmul.f32 0.6931472, %v1818_v2  ;;  %v1820_v25 = vpop.eup %1819  ;;  %1839 = vlog2.f32 %v2769_v10 }
 0x222   : > { %v1143_v18 = vadd.f32 %v1112_v8, %v3270_v11  ;;  %v1822_v39 = vpop.eup %1821  ;;  %v1116_v17 = vmul.f32 0.6931472, %v1820_v25  ;;  %v3273_v8 = vld [vmem:[#allocation44_spill] sm:$0xff]  ;;  %1841 = vlog2.f32 %v2785_v7 }
 0x223   : > { %v1144_v21 = vadd.f32 %v1114_v53, %v3271_v0  ;;  %v1118_v24 = vmul.f32 0.6931472, %v1822_v39  ;;  %v1824_v28 = vpop.eup %1823  ;;  %v3274_v39 = vld [vmem:[#allocation47_spill] sm:$0xff]  ;;  %1843 = vlog2.f32 %v2811_v5 }
 0x224   : > { %v1145_v46 = vadd.f32 %v1116_v17, %v3272_v59  ;;  %v1826_v2 = vpop.eup %1825  ;;  %1845 = vlog2.f32 %v2826_v54 }
 0x225   : > { %v1122_v25 = vmul.f32 0.6931472, %v1826_v2 }
 0x26c   : > { %v824_v43 = vpop.xlane.xlu0 %823 }
 0x26d   : > { %v871_v60 = vmul.f32 %v2935_v41, %v824_v43 }
 0x26f   : > { %vm887_vm0 = vcmp.gt.f32.partialorder %v2626_v37, %v871_v60 }
 0x270   : > { %v827_v22 = vpop.xlane.xlu1 %826  ;;  %v2947_v1 = vsel %vm887_vm0, 1.0, %v1943_v30 }
 0x271   : > { %v872_v51 = vmul.f32 %v2935_v41, %v827_v22  ;;  %v1120_v22 = vmul.f32 0.6931472, %v1824_v28 }
 0x273   : > { %vm888_vm8 = vcmp.gt.f32.partialorder %v2648_v49, %v872_v51  ;;  %v1147_v17 = vadd.f32 %v1120_v22, %v3274_v39 }
 0x274   : > { %v1177_v16 = vpop.xlane.xlu1 %1176  ;;  %v830_v27 = vpop.xlane.xlu0 %829  ;;  %v1571_v37 = vsel %vm888_vm8, 1.0, %v1943_v30 }
 0x275   : > { %v1223_v19 = vsub.f32 %v1143_v18, %v1177_v16  ;;  %v873_v56 = vmul.f32 %v2935_v41, %v830_v27  ;;  %v1299_v2 = vsel %vm1255_vm3, %v1571_v37, 0.0 }
 0x277   : > { %v1239_v35 = vmul.f32 %v2947_v1, %v1223_v19  ;;  %vm889_vm9 = vcmp.gt.f32.partialorder %v2657_v29, %v873_v56  ;;  %v1146_v29 = vadd.f32 %v1118_v24, %v3273_v8  ;;  %v1828_v56 = vpop.eup %1827  ;;  %v3276_v8 = vld [vmem:[#allocation49_spill] sm:$0xff] }
 0x278   : > { %v1180_v34 = vpop.xlane.xlu0 %1179  ;;  %v1572_v43 = vsel %vm889_vm9, 1.0, %v1943_v30 }
 0x279   : > { %v833_v12 = vpop.xlane.xlu1 %832  ;;  %v1224_v14 = vsub.f32 %v1144_v21, %v1180_v34  ;;  %v1256_v38 = vsel %vm1255_vm3, %v1239_v35, 0.0  ;;  %v1830_v35 = vpop.eup %1829 }
 0x27a   : > { %v874_v49 = vmul.f32 %v2935_v41, %v833_v12 }
 0x27b   : > { %v1240_v40 = vmul.f32 %v1571_v37, %v1224_v14  ;;  %v3275_v14 = vld [vmem:[#allocation46_spill] sm:$0xff] }
 0x27c   : > { %v1183_v45 = vpop.xlane.xlu0 %1182  ;;  %vm890_vm10 = vcmp.gt.f32.partialorder %v2667_v32, %v874_v49  ;;  %v1148_v24 = vadd.f32 %v1122_v25, %v3275_v14  ;;  %v1298_v25 = vsel %vm1255_vm3, %v2947_v1, 0.0 }
 0x27d   : > { %v1257_v26 = vsel %vm1255_vm3, %v1240_v40, 0.0  ;;  %v836_v52 = vpop.xlane.xlu1 %835  ;;  %v1225_v15 = vsub.f32 %v1145_v46, %v1183_v45  ;;  %v1573_v27 = vsel %vm890_vm10, 1.0, %v1943_v30  ;;  %v1126_v46 = vmul.f32 0.6931472, %v1830_v35 }
 0x27e   : > { %v1258_v20 = vadd.f32 %v1257_v26, %v1256_v38  ;;  %v875_v60 = vmul.f32 %v2935_v41, %v836_v52  ;;  %v1832_v26 = vpop.eup %1831 }
 0x27f   : > { %v1241_v53 = vmul.f32 %v1572_v43, %v1225_v15 }
 0x280   : > { %v1186_v36 = vpop.xlane.xlu0 %1185  ;;  %vm891_vm11 = vcmp.gt.f32.partialorder %v2688_v50, %v875_v60  ;;  %v1124_v50 = vmul.f32 0.6931472, %v1828_v56  ;;  %v1128_v60 = vmul.f32 0.6931472, %v1832_v26 }
 0x281   : > { %v1259_v51 = vsel %vm1255_vm3, %v1241_v53, 0.0  ;;  %v839_v11 = vpop.xlane.xlu1 %838  ;;  %v1226_v18 = vsub.f32 %v1146_v29, %v1186_v36  ;;  %v1574_v12 = vsel %vm891_vm11, 1.0, %v1943_v30  ;;  %v1834_v29 = vpop.eup %1833 }
 0x282   : > { %v1260_v16 = vadd.f32 %v1259_v51, %v1258_v20  ;;  %v876_v32 = vmul.f32 %v2935_v41, %v839_v11  ;;  %v3277_v11 = vld [vmem:[#allocation48_spill] sm:$0xff]  ;;  %v1130_v56 = vmul.f32 0.6931472, %v1834_v29 }
 0x283   : > { %v1242_v19 = vmul.f32 %v1573_v27, %v1226_v18  ;;  %v1150_v18 = vadd.f32 %v1126_v46, %v3277_v11 }
 0x284   : > { %v1189_v31 = vpop.xlane.xlu0 %1188  ;;  %vm892_vm12 = vcmp.gt.f32.partialorder %v2719_v3, %v876_v32  ;;  %v1149_v3 = vadd.f32 %v1124_v50, %v3276_v8 }
 0x285   : > { %v1261_v0 = vsel %vm1255_vm3, %v1242_v19, 0.0  ;;  %v842_v21 = vpop.xlane.xlu1 %841  ;;  %v1227_v34 = vsub.f32 %v1147_v17, %v1189_v31  ;;  %v1575_v57 = vsel %vm892_vm12, 1.0, %v1943_v30  ;;  %v1300_v19 = vadd.f32 %v1299_v2, %v1298_v25  ;;  %v1836_v17 = vpop.eup %1835 }
 0x286   : > { %v1262_v48 = vadd.f32 %v1261_v0, %v1260_v16  ;;  %v877_v49 = vmul.f32 %v2935_v41, %v842_v21  ;;  %v1301_v16 = vsel %vm1255_vm3, %v1572_v43, 0.0  ;;  %v1303_v31 = vsel %vm1255_vm3, %v1573_v27, 0.0 }
 0x287   : > { %v1243_v40 = vmul.f32 %v1574_v12, %v1227_v34  ;;  %v1302_v1 = vadd.f32 %v1301_v16, %v1300_v19  ;;  %v1151_v27 = vadd.f32 %v1128_v60, %v2426_v55  ;;  %v1132_v50 = vmul.f32 0.6931472, %v1836_v17 }
 0x288   : > { %v1192_v59 = vpop.xlane.xlu0 %1191  ;;  %vm893_vm13 = vcmp.gt.f32.partialorder %v2674_v9, %v877_v49  ;;  %v1305_v9 = vsel %vm1255_vm3, %v1574_v12, 0.0  ;;  %v1307_v10 = vsel %vm1255_vm3, %v1575_v57, 0.0  ;;  %v1152_v49 = vadd.f32 %v1130_v56, %v2424_v4 }
 0x289   : > { %v1263_v28 = vsel %vm1255_vm3, %v1243_v40, 0.0  ;;  %v845_v45 = vpop.xlane.xlu1 %844  ;;  %v1228_v38 = vsub.f32 %v1148_v24, %v1192_v59  ;;  %v1576_v44 = vsel %vm893_vm13, 1.0, %v1943_v30  ;;  %v1304_v14 = vadd.f32 %v1303_v31, %v1302_v1 }
 0x28a   : > { %v1264_v52 = vadd.f32 %v1263_v28, %v1262_v48  ;;  %v878_v15 = vmul.f32 %v2935_v41, %v845_v45  ;;  %v1838_v45 = vpop.eup %1837  ;;  %v1153_v8 = vadd.f32 %v1132_v50, %v2436_v62 }
 0x28b   : > { %v1244_v20 = vmul.f32 %v1575_v57, %v1228_v38  ;;  %v1306_v12 = vadd.f32 %v1305_v9, %v1304_v14  ;;  %v1309_v38 = vsel %vm1255_vm3, %v1576_v44, 0.0 }
 0x28c   : > { %v1195_v22 = vpop.xlane.xlu0 %1194  ;;  %vm894_vm14 = vcmp.gt.f32.partialorder %v2731_v61, %v878_v15 }
 0x28d   : > { %v1265_v53 = vsel %vm1255_vm3, %v1244_v20, 0.0  ;;  %v848_v36 = vpop.xlane.xlu1 %847  ;;  %v1229_v51 = vsub.f32 %v1149_v3, %v1195_v22  ;;  %v1577_v48 = vsel %vm894_vm14, 1.0, %v1943_v30  ;;  %v1134_v3 = vmul.f32 0.6931472, %v1838_v45 }
 0x28e   : > { %v1266_v32 = vadd.f32 %v1265_v53, %v1264_v52  ;;  %v879_v37 = vmul.f32 %v2935_v41, %v848_v36  ;;  %v1311_v7 = vsel %vm1255_vm3, %v1577_v48, 0.0 }
 0x28f   : > { %v1245_v39 = vmul.f32 %v1576_v44, %v1229_v51  ;;  %v1840_v51 = vpop.eup %1839 }
 0x290   : > { %v1198_v0 = vpop.xlane.xlu0 %1197  ;;  %vm895_vm15 = vcmp.gt.f32.partialorder %v2695_v58, %v879_v37  ;;  %v1136_v17 = vmul.f32 0.6931472, %v1840_v51  ;;  %v3281_v51 = vld [vmem:[#allocation53_spill] sm:$0xff] }
 0x291   : > { %v1267_v43 = vsel %vm1255_vm3, %v1245_v39, 0.0  ;;  %v851_v21 = vpop.xlane.xlu1 %850  ;;  %v1230_v34 = vsub.f32 %v1150_v18, %v1198_v0  ;;  %v1578_v52 = vsel %vm895_vm15, 1.0, %v1943_v30  ;;  %v1842_v39 = vpop.eup %1841 }
 0x292   : > { %v1268_v35 = vadd.f32 %v1267_v43, %v1266_v32  ;;  %v880_v61 = vmul.f32 %v2935_v41, %v851_v21  ;;  %v1313_v58 = vsel %vm1255_vm3, %v1578_v52, 0.0 }
 0x293   : > { %v1246_v24 = vmul.f32 %v1577_v48, %v1230_v34  ;;  %v1138_v48 = vmul.f32 0.6931472, %v1842_v39 }
 0x294   : > { %vm896_vm1 = vcmp.gt.f32.partialorder %v2751_v63, %v880_v61  ;;  %v1201_v40 = vpop.xlane.xlu0 %1200  ;;  %v1308_v63 = vadd.f32 %v1307_v10, %v1306_v12  ;;  %v1844_v10 = vpop.eup %1843 }
 0x295   : > { %v1269_v59 = vsel %vm1255_vm3, %v1246_v24, 0.0  ;;  %v1204_v46 = vpop.xlane.xlu1 %1203  ;;  %v1231_v28 = vsub.f32 %v1151_v27, %v1201_v40  ;;  %v1579_v4 = vsel %vm896_vm1, 1.0, %v1943_v30  ;;  %v3279_v27 = vld [vmem:[#allocation51_spill] sm:$0xff]  ;;  %v1846_v40 = vpop.eup %1845 }
 0x296   : > { %v1270_v26 = vadd.f32 %v1269_v59, %v1268_v35  ;;  %v1232_v55 = vsub.f32 %v1152_v49, %v1204_v46  ;;  %v1310_v29 = vadd.f32 %v1309_v38, %v1308_v63  ;;  %v1315_v18 = vsel %vm1255_vm3, %v1579_v4, 0.0 }
 0x297   : > { %v1247_v57 = vmul.f32 %v1578_v52, %v1231_v28  ;;  %v1155_v50 = vadd.f32 %v1136_v17, %v3279_v27  ;;  %v1140_v52 = vmul.f32 0.6931472, %v1844_v10 }
 0x298   : > { %v1248_v15 = vmul.f32 %v1579_v4, %v1232_v55  ;;  %v854_v20 = vpop.xlane.xlu0 %853  ;;  %v1312_v11 = vadd.f32 %v1311_v7, %v1310_v29  ;;  %v3280_v4 = vld [vmem:[#allocation52_spill] sm:$0xff] }
 0x299   : > { %v1271_v2 = vsel %vm1255_vm3, %v1247_v57, 0.0  ;;  %v857_v22 = vpop.xlane.xlu1 %856  ;;  %v881_v60 = vmul.f32 %v2935_v41, %v854_v20  ;;  %v1142_v57 = vmul.f32 0.6931472, %v1846_v40 }
 0x29a   : > { %v1272_v53 = vadd.f32 %v1271_v2, %v1270_v26  ;;  %v882_v36 = vmul.f32 %v2935_v41, %v857_v22  ;;  %v1273_v62 = vsel %vm1255_vm3, %v1248_v15, 0.0  ;;  %v1314_v5 = vadd.f32 %v1313_v58, %v1312_v11 }
 0x29b   : > { %vm897_vm2 = vcmp.gt.f32.partialorder %v2858_v42, %v881_v60  ;;  %v3278_v42 = vld [vmem:[#allocation50_spill] sm:$0xff]  ;;  %v1157_v11 = vadd.f32 %v1140_v52, %v3281_v51 }
 0x29c   : > { %v1580_v25 = vsel %vm897_vm2, 1.0, %v1943_v30  ;;  %v1274_v16 = vadd.f32 %v1273_v62, %v1272_v53  ;;  %v1207_v32 = vpop.xlane.xlu0 %1206  ;;  %vm898_vm4 = vcmp.gt.f32.partialorder %v2874_v23, %v882_v36  ;;  %v1316_v56 = vadd.f32 %v1315_v18, %v1314_v5 }
 0x29d   : > { %v860_v44 = vpop.xlane.xlu1 %859  ;;  %v1233_v19 = vsub.f32 %v1153_v8, %v1207_v32  ;;  %v1317_v54 = vsel %vm1255_vm3, %v1580_v25, 0.0  ;;  %v1154_v0 = vadd.f32 %v1134_v3, %v3278_v42  ;;  %v1581_v9 = vsel %vm898_vm4, 1.0, %v1943_v30 }
 0x29e   : > { %v883_v37 = vmul.f32 %v2935_v41, %v860_v44  ;;  %v1318_v43 = vadd.f32 %v1317_v54, %v1316_v56 }
 0x29f   : > { %v1249_v31 = vmul.f32 %v1580_v25, %v1233_v19 }
 0x2a0   : > { %vm899_vm5 = vcmp.gt.f32.partialorder %v2893_v13, %v883_v37  ;;  %v1210_v1 = vpop.xlane.xlu0 %1209  ;;  %v1319_v13 = vsel %vm1255_vm3, %v1581_v9, 0.0 }
 0x2a1   : > { %v1275_v21 = vsel %vm1255_vm3, %v1249_v31, 0.0  ;;  %v863_v34 = vpop.xlane.xlu1 %862  ;;  %v1234_v23 = vsub.f32 %v1154_v0, %v1210_v1  ;;  %v1582_v24 = vsel %vm899_vm5, 1.0, %v1943_v30  ;;  %v1320_v12 = vadd.f32 %v1319_v13, %v1318_v43 }
 0x2a2   : > { %v1276_v35 = vadd.f32 %v1275_v21, %v1274_v16  ;;  %v884_v61 = vmul.f32 %v2935_v41, %v863_v34  ;;  %v1321_v55 = vsel %vm1255_vm3, %v1582_v24, 0.0 }
 0x2a3   : > { %v1250_v14 = vmul.f32 %v1581_v9, %v1234_v23  ;;  %v1322_v20 = vadd.f32 %v1321_v55, %v1320_v12 }
 0x2a4   : > { %vm900_vm6 = vcmp.gt.f32.partialorder %v2910_v6, %v884_v61  ;;  %v1213_v49 = vpop.xlane.xlu0 %1212  ;;  %v1156_v6 = vadd.f32 %v1138_v48, %v3280_v4 }
 0x2a5   : > { %v1277_v59 = vsel %vm1255_vm3, %v1250_v14, 0.0  ;;  %v866_v46 = vpop.xlane.xlu1 %865  ;;  %v1235_v28 = vsub.f32 %v1155_v50, %v1213_v49  ;;  %v1583_v45 = vsel %vm900_vm6, 1.0, %v1943_v30 }
 0x2a6   : > { %v1278_v38 = vadd.f32 %v1277_v59, %v1276_v35  ;;  %v885_v26 = vmul.f32 %v2935_v41, %v866_v46  ;;  %v1323_v7 = vsel %vm1255_vm3, %v1583_v45, 0.0 }
 0x2a7   : > { %v1251_v63 = vmul.f32 %v1582_v24, %v1235_v28  ;;  %v1324_v53 = vadd.f32 %v1323_v7, %v1322_v20 }
 0x2a8   : > { %vm901_vm7 = vcmp.gt.f32.partialorder %v2924_v33, %v885_v26  ;;  %v1216_v15 = vpop.xlane.xlu0 %1215  ;;  %v3282_v33 = vld [vmem:[#allocation26_spill] sm:$0xff] }
 0x2a9   : > { %v1279_v8 = vsel %vm1255_vm3, %v1251_v63, 0.0  ;;  %v869_v3 = vpop.xlane.xlu1 %868  ;;  %v1236_v29 = vsub.f32 %v1156_v6, %v1216_v15  ;;  %v1584_v2 = vsel %vm901_vm7, 1.0, %v1943_v30  ;;  %v1158_v62 = vadd.f32 %v1142_v57, %v3282_v33 }
 0x2aa   : > { %v1280_v22 = vadd.f32 %v1279_v8, %v1278_v38  ;;  %v886_v60 = vmul.f32 %v2935_v41, %v869_v3  ;;  %v1325_v58 = vsel %vm1255_vm3, %v1584_v2, 0.0 }
 0x2ab   : > { %v1252_v36 = vmul.f32 %v1583_v45, %v1236_v29  ;;  %v1326_v5 = vadd.f32 %v1325_v58, %v1324_v53 }
 0x2ac   : > { %vm902_vm0 = vcmp.gt.f32.partialorder %v2883_v47, %v886_v60  ;;  %v1219_v18 = vpop.xlane.xlu0 %1218 }
 0x2ad   : > { %v1281_v25 = vsel %vm1255_vm3, %v1252_v36, 0.0  ;;  %v1222_v16 = vpop.xlane.xlu1 %1221  ;;  %v1585_v32 = vsel %vm902_vm0, 1.0, %v1943_v30  ;;  %v1237_v44 = vsub.f32 %v1157_v11, %v1219_v18 }
 0x2ae   : > { %v1282_v19 = vadd.f32 %v1281_v25, %v1280_v22  ;;  %v1238_v41 = vsub.f32 %v1158_v62, %v1222_v16  ;;  %v1327_v37 = vsel %vm1255_vm3, %v1585_v32, 0.0 }
 0x2af   : > { %v1253_v54 = vmul.f32 %v1584_v2, %v1237_v44  ;;  %v1328_v39 = vadd.f32 %v1327_v37, %v1326_v5 }
 0x2b0   : > { %v1254_v17 = vmul.f32 %v1585_v32, %v1238_v41 }
 0x2b1   : > { %v1283_v56 = vsel %vm1255_vm3, %v1253_v54, 0.0  ;;  %1329 = vadd.xlane.f32.xlu1 %v1328_v39 }
 0x2b2   : > { %v1284_v47 = vadd.f32 %v1283_v56, %v1282_v19  ;;  %v1285_v31 = vsel %vm1255_vm3, %v1254_v17, 0.0 }
 0x2b4   : > { %v1286_v42 = vadd.f32 %v1285_v31, %v1284_v47 }
 0x2b6   : > { %1287 = vadd.xlane.f32.xlu0 %v1286_v42 }
 0x33e   : > { %v1330_v0 = vpop.xlane.xlu1 %1329 }
 0x33f   : > { %v1331_v30 = vrot.slane %v1330_v0, 4 }
 0x341   : > { %v1332_v1 = vadd.f32 %v1331_v30, %v1330_v0 }
 0x343   : > { %v1333_v43 = vrot.slane %v1332_v1, 2  ;;  %v1288_v21 = vpop.xlane.xlu0 %1287 }
 0x344   : > { %v1289_v34 = vrot.slane %v1288_v21, 4 }
 0x345   : > { %v1334_v23 = vadd.f32 %v1333_v43, %v1332_v1 }
 0x346   : > { %v1290_v9 = vadd.f32 %v1289_v34, %v1288_v21 }
 0x347   : > { %v1335_v48 = vrot.slane %v1334_v23, 1 }
 0x348   : > { %v1291_v35 = vrot.slane %v1290_v9, 2 }
 0x349   : > { %v1336_v27 = vadd.f32 %v1335_v48, %v1334_v23 }
 0x34a   : > { %v1292_v61 = vadd.f32 %v1291_v35, %v1290_v9 }
 0x34c   : > { %v1293_v14 = vrot.slane %v1292_v61, 1 }
 0x34e   : > { %v1294_v24 = vadd.f32 %v1293_v14, %v1292_v61 }
 0x350   : > { %1670 = vpush %v1294_v24 }
 0x351   : > { %1672 = vpush %v1336_v27 }
 0x381   : > { %s1671_s19 = spop %1670 }
 0x382   : > { %v1296_v50 = vstv %s1671_s19  ;;  %s1673_s20 = spop %1672 }
 0x383   : > { %1297 = vst [vmem:[%s266_s13] sm:$0xff] %v1296_v50  ;;  %v1338_v10 = vstv %s1673_s20 }
 0x384   : > { %1339 = vst [vmem:[%s273_s11] sm:$0xff] %v1338_v10 }
 0x385   : > { %1860 = shalt.err (!%p1857_p3)
}
 0x386   : > { %s1861_s11 = scalar_lea.hbm %s3063_s18, 128  ;;  %s1865_s19 = scalar_lea.hbm %s3137_s4, 512 }
 0x387   : > { %p1862_p4 = scmp.ne.s32.totalorder %s3063_s18, %s1861_s11  ;;  %p1866_p9 = scmp.lt.u32.totalorder %s3063_s18, %s3137_s4 }
 0x388   : > { %p1867_p10 = scmp.lt.u32.totalorder %s1865_s19, %s1861_s11  ;;  %p1869_p12 = scmp.lt.u32.totalorder %s1861_s11, %s3063_s18 }
 0x389   : > { %p1863_p7 = pnand %p1862_p4, %p2022_p5 }
 0x38a   : > { %p1868_p11 = por %p1867_p10, %p1866_p9 }
 0x38b   : > { %p1864_p8 = pneg %p1863_p7 }
 0x38c   : > { %p1870_p13 = por %p1869_p12, %p1868_p11 }
 0x38e   : > { %p1871_p0 = pnand %p1870_p13, %p1864_p8 }
 0x390   : > { %1874 = shalt.err (!%p1871_p0)
}
 0x391   : > { %1674 = dma.vmem_to_hbm [thread:$0]  (%p2022_p5), %s3065_s14, 128, %s3063_s18, %s1389_s0  }
 0x392   : > { %s1394_s22 = scalar_lea.sflag [#allocation6], %s3054_s30  ;;  %s1875_s29 = scalar_lea.vmem %s3058_s12, 128 }
 0x393   : > { %p1876_p1 = scmp.ne.s32.totalorder %s3058_s12, %s1875_s29  ;;  %s1945_s10 = smov [#allocation5]  }
 0x394   : > { %s1879_s16 = sshll.u32 %s1945_s10, 4  ;;  %s1880_s16 = int_to_ptr.vmem [resolvable:$false] %s1879_s16 }
 0x395   : > { %p1877_p2 = pnand %p1876_p1, %p2022_p5  ;;  %s1881_s17 = scalar_lea.vmem %s1880_s16, 256 }
 0x396   : > { %p1882_p4 = scmp.lt.s32.totalorder %s3058_s12, %s1880_s16  ;;  %p1883_p7 = scmp.lt.s32.totalorder %s1881_s17, %s1875_s29 }
 0x397   : > { %p1878_p3 = pneg %p1877_p2 }
 0x398   : > { %p1884_p8 = por %p1883_p7, %p1882_p4 }
 0x39a   : > { %p1885_p9 = pnand %p1884_p8, %p1878_p3 }
 0x39c   : > { %1888 = shalt.err (!%p1885_p9)
}
 0x39d   : > { %s1889_s30 = scalar_lea.hbm %s3070_s27, 128  ;;  %s1893_s0 = scalar_lea.hbm %s3138_s5, 512 }
 0x39e   : > { %p1890_p10 = scmp.ne.s32.totalorder %s3070_s27, %s1889_s30  ;;  %p1894_p13 = scmp.lt.u32.totalorder %s3070_s27, %s3138_s5 }
 0x39f   : > { %p1895_p0 = scmp.lt.u32.totalorder %s1893_s0, %s1889_s30  ;;  %p1897_p2 = scmp.lt.u32.totalorder %s1889_s30, %s3070_s27 }
 0x3a0   : > { %p1891_p11 = pnand %p1890_p10, %p2022_p5 }
 0x3a1   : > { %p1896_p1 = por %p1895_p0, %p1894_p13 }
 0x3a2   : > { %p1892_p12 = pneg %p1891_p11 }
 0x3a3   : > { %p1898_p3 = por %p1897_p2, %p1896_p1 }
 0x3a5   : > { %p1899_p4 = pnand %p1898_p3, %p1892_p12 }
 0x3a7   : > { %1902 = shalt.err (!%p1899_p4)
}
 0x3a8   : > { %1675 = dma.vmem_to_hbm [thread:$0]  (%p2022_p5), %s3058_s12, 128, %s3070_s27, %s1394_s22  }
 0x3a9 PF: > { %p1685_p7 = scmp.ge.s32.totalorder %s1941_s26, 2  ;;  %s1441_s15 = sand.u32 1, %s1929_s23  }
 0x3aa   : > { %s1442_s19 = scalar_lea.sflag [#allocation4], %s1441_s15 }
 0x3ab   : > { %p1679_p8 = pnand %p1685_p7, %p2026_p6 }
 0x3ad   : > { %1920 = dma.done.wait (!%p1679_p8), %s1442_s19, 128  }
 0x3ae   : > { %1922 = vsyncadd (!%p1679_p8), %s1442_s19, 4294967168  ;;  %s1451_s20 = scalar_lea.sflag [#allocation6], %s1441_s15 }
 0x3af   : > { %1924 = dma.done.wait (!%p1679_p8), %s1451_s20, 128  }
 0x3b0   : > { %1926 = vsyncadd (!%p1679_p8), %s1451_s20, 4294967168  ;;  %p21_p5 = scmp.ge.s32.totalorder %s2009_s28, 6   ;;  %s3283_s23 = smov %s1933_s24 }
 0x3b1   : > { %s3284_s24 = smov %s1937_s25  ;;  %s3285_s25 = smov %s2020_s7 }
 0x3b2   : > { %s3286_s26 = smov %s2009_s28  ;;  %23 = sbr.rel (!%p21_p5) target bundleno = 7 (0x7), region = 103 }
 0x3b9   :  { %1464 = vsyncpa [#allocation4], 1 }
 0x3ba   :  { %1466 = vsyncpa [#allocation4 + $0x1], 1 }
 0x3bb   :  { %1467 = vsyncpa [#allocation6], 1 }
 0x3bc   :  { %1469 = vsyncpa [#allocation6 + $0x1], 1 }

</bundles_post_ra>
